<compile_context>
chip_gen: v7x
topology: tpu7x:2x2x1
jax: 0.10.0
libtpu: 0.0.40
codegen_flags: <defaults>
</compile_context>

<pallas_src>
import math
import functools

import jax
import jax.numpy as jnp
import numpy as np
from jax.experimental import pallas as pl
from jax.experimental.pallas import tpu as pltpu


# ------------------------------ small helpers --------------------------------

def _rmsnorm(x, w, eps):
    ms = jnp.mean(x * x, axis=-1, keepdims=True)
    return w * (x * jax.lax.rsqrt(ms + eps))


def _vmem_limit_bytes():
    """Generation-aware VMEM limit: ~100 MiB on 128-MiB parts, ~56 MiB on v7x."""
    try:
        cap = pltpu.get_tpu_info().vmem_capacity_bytes
        return int(min(cap - 8 * 1024 * 1024, 100 * 1024 * 1024))
    except Exception:
        return 48 * 1024 * 1024


def _pick_ffn_chunk(hidden):
    for c in (512, 256, 128):
        if hidden % c == 0:
            return c
    return hidden


# -------------------------- pass 1: QKV + RoPE kernel --------------------------

def qkv_rope_kernel(x_ref, wq_ref, wk_ref, wv_ref, attn_nw_ref,
                    cos_ref, sin_lo_ref, sin_hi_ref,
                    xq_ref, xk_ref, xv_ref, *, head_dim, eps):
    f32 = jnp.float32
    bf16 = jnp.bfloat16
    half = head_dim // 2

    x = x_ref[0]                                                   # (tq, D) f32
    xn_b = _rmsnorm(x, attn_nw_ref[...], eps).astype(bf16)

    xq = jnp.dot(xn_b, wq_ref[...], preferred_element_type=f32)   # (tq, Dq)
    xk = jnp.dot(xn_b, wk_ref[...], preferred_element_type=f32)   # (tq, Dkv)
    xv = jnp.dot(xn_b, wv_ref[...], preferred_element_type=f32)   # (tq, Dkv)

    cos_t = cos_ref[...]          # (tq, Dq) pre-tiled across heads (f32)
    sin_lo = sin_lo_ref[...]      # nonzero only on per-head real half
    sin_hi = sin_hi_ref[...]      # nonzero only on per-head imag half

    def rope(v):
        # Per-head [real-half | imag-half] column layout:
        #   out_real = r*cos - i*sin ; out_imag = i*cos + r*sin
        # The XLU rolls bring the complementary half into place; wrap-around
        # between heads is masked because sin_lo/sin_hi are zero there.
        L = v.shape[-1]
        imag_here = pltpu.roll(v, L - half, axis=1)   # value at column p + half
        real_here = pltpu.roll(v, half, axis=1)       # value at column p - half
        return (v * cos_t[:, :L]
                + imag_here * sin_lo[:, :L]
                + real_here * sin_hi[:, :L])

    xq_ref[0] = rope(xq).astype(bf16)
    xk_ref[0] = rope(xk).astype(bf16)
    xv_ref[0] = xv.astype(bf16)


# ------------------ pass 2: attention + wo + residual + FFN --------------------

def attn_ffn_kernel(x_ref, xq_ref, xk_ref, xv_ref, wo_ref, ffn_nw_ref,
                    w1_ref, w3_ref, w2_ref,
                    out_ref,
                    acc_scr, hn_scr,
                    *, n_heads, n_kv_heads, head_dim, eps):
    f32 = jnp.float32
    bf16 = jnp.bfloat16
    n_rep = n_heads // n_kv_heads
    Dh = head_dim
    scale = 1.0 / math.sqrt(Dh)
    hc = pl.program_id(2)

    # ---- attention + residual + FFN-norm: only on the first hidden-chunk ----
    @pl.when(hc == 0)
    def _attention_and_norm():
        x = x_ref[0]                                   # (tq, D)   f32
        xq = xq_ref[0]                                 # (tq, Dq)  bf16 (roped)
        xk = xk_ref[0]                                 # (S,  Dkv) bf16 (roped)
        xv = xv_ref[0]                                 # (S,  Dkv) bf16
        acc = x                                        # residual
        for g in range(n_kv_heads):
            k_g = xk[:, g * Dh:(g + 1) * Dh]           # (S, Dh)
            v_g = xv[:, g * Dh:(g + 1) * Dh]           # (S, Dh)
            for r in range(n_rep):
                h = g * n_rep + r
                q_h = xq[:, h * Dh:(h + 1) * Dh]       # (tq, Dh)
                s = jax.lax.dot_general(
                    q_h, k_g, (((1,), (1,)), ((), ())),
                    preferred_element_type=f32) * scale            # (tq, S)
                s = s - jnp.max(s, axis=-1, keepdims=True)
                p = jnp.exp(s)
                p = p * pl.reciprocal(jnp.sum(p, axis=-1, keepdims=True),
                                      approx=True)
                o_h = jnp.dot(p.astype(bf16), v_g,
                              preferred_element_type=f32)           # (tq, Dh)
                # Fused output projection: no (S, Dq) scratch roundtrip.
                acc = acc + jnp.dot(o_h.astype(bf16),
                                    wo_ref[h * Dh:(h + 1) * Dh, :],
                                    preferred_element_type=f32)
        acc_scr[...] = acc                              # h = x + attention(...)
        hn_scr[...] = _rmsnorm(acc, ffn_nw_ref[...], eps).astype(bf16)

    # ---- SwiGLU FFN: one pipelined hidden chunk per grid step ----
    hn_b = hn_scr[...]                                              # (tq, D) bf16
    a = jnp.dot(hn_b, w1_ref[...], preferred_element_type=f32)      # (tq, t_h)
    b = jnp.dot(hn_b, w3_ref[...], preferred_element_type=f32)
    gate = (a * jax.nn.sigmoid(a)) * b                              # SiLU * V, f32
    acc_scr[...] = acc_scr[...] + jnp.dot(gate.astype(bf16), w2_ref[...],
                                          preferred_element_type=f32)

    @pl.when(hc == pl.num_programs(2) - 1)
    def _write_out():
        out_ref[0] = acc_scr[...]


# ----------------------------- host-side helpers -------------------------------

def _deinterleave_columns(w, n_heads, head_dim):
    """Permute projection output columns so each head is [reals | imags]."""
    idx = []
    for h in range(n_heads):
        base = h * head_dim
        idx.extend(base + np.arange(0, head_dim, 2))
        idx.extend(base + np.arange(1, head_dim, 2))
    return w[:, np.asarray(idx, dtype=np.int32)]


def rope_tables(seq_len, head_dim, n_heads, start_pos=0, theta=10000.0):
    """cos / signed-sin tables, pre-tiled across heads to (S, n_heads*head_dim)."""
    inv = 1.0 / (theta ** (np.arange(0, head_dim, 2, dtype=np.float32) / head_dim))
    pos = np.arange(start_pos, start_pos + seq_len, dtype=np.float32)
    ang = np.outer(pos, inv).astype(np.float32)            # (S, Dh/2)
    cos_h, sin_h = np.cos(ang), np.sin(ang)
    zeros = np.zeros_like(sin_h)
    cos_tab = np.concatenate([cos_h, cos_h], axis=-1)      # (S, Dh)
    sin_lo = np.concatenate([-sin_h, zeros], axis=-1)      # coeff on shifted imag
    sin_hi = np.concatenate([zeros, sin_h], axis=-1)       # coeff on shifted real
    tile = lambda t: np.tile(t, (1, n_heads))
    return (jnp.asarray(tile(cos_tab)), jnp.asarray(tile(sin_lo)),
            jnp.asarray(tile(sin_hi)), jnp.asarray(cos_h), jnp.asarray(sin_h))


# ---------------------------------- wrapper -------------------------------------

def encoder_block(x, params, *, n_heads, n_kv_heads, head_dim, eps,
                  start_pos=0, rope_theta=10000.0, q_tile=256, ffn_chunk=None,
                  single_buffer_weights=True):
    B, S, D = x.shape
    Dq = n_heads * head_dim
    Dkv = n_kv_heads * head_dim
    hidden = params['w1'].shape[1]

    tq = min(q_tile, S)
    assert S % tq == 0 and (tq == S or tq % 8 == 0), "bad query tile size"
    if ffn_chunk is None:
        ffn_chunk = _pick_ffn_chunk(hidden)
    ffn_chunk = min(ffn_chunk, hidden)
    assert hidden % ffn_chunk == 0, "hidden dim must be a multiple of ffn_chunk"

    bf16, f32 = jnp.bfloat16, jnp.float32
    wq = _deinterleave_columns(params['wq'], n_heads, head_dim).astype(bf16)
    wk = _deinterleave_columns(params['wk'], n_kv_heads, head_dim).astype(bf16)
    wv = params['wv'].astype(bf16)
    wo = params['wo'].astype(bf16)
    w1 = params['w1'].astype(bf16)
    w2 = params['w2'].astype(bf16)
    w3 = params['w3'].astype(bf16)
    attn_nw = params['attn_norm'].reshape(1, D).astype(f32)
    ffn_nw = params['ffn_norm'].reshape(1, D).astype(f32)
    cos_t, sin_lo, sin_hi, _, _ = rope_tables(S, head_dim, n_heads,
                                              start_pos, rope_theta)

    vmem_limit = _vmem_limit_bytes()

    def resident(shape):
        n = len(shape)
        if single_buffer_weights:
            return pl.BlockSpec(shape, lambda *_: (0,) * n,
                                pipeline_mode=pl.Buffered(1))
        return pl.BlockSpec(shape, lambda *_: (0,) * n)

    # ---- pass 1: RMSNorm + QKV + RoPE, grid over (batch, query tile) ----
    qkv_kernel = functools.partial(qkv_rope_kernel, head_dim=head_dim, eps=eps)
    xq, xk, xv = pl.pallas_call(
        qkv_kernel,
        out_shape=(jax.ShapeDtypeStruct((B, S, Dq), bf16),
                   jax.ShapeDtypeStruct((B, S, Dkv), bf16),
                   jax.ShapeDtypeStruct((B, S, Dkv), bf16)),
        grid=(B, S // tq),
        in_specs=[
            pl.BlockSpec((1, tq, D), lambda b, q: (b, q, 0)),       # x tile
            resident((D, Dq)), resident((D, Dkv)), resident((D, Dkv)),
            resident((1, D)),                                        # attn norm
            pl.BlockSpec((tq, Dq), lambda b, q: (q, 0)),             # cos
            pl.BlockSpec((tq, Dq), lambda b, q: (q, 0)),             # sin_lo
            pl.BlockSpec((tq, Dq), lambda b, q: (q, 0)),             # sin_hi
        ],
        out_specs=(pl.BlockSpec((1, tq, Dq), lambda b, q: (b, q, 0)),
                   pl.BlockSpec((1, tq, Dkv), lambda b, q: (b, q, 0)),
                   pl.BlockSpec((1, tq, Dkv), lambda b, q: (b, q, 0))),
        compiler_params=pltpu.CompilerParams(
            dimension_semantics=("parallel", "parallel"),
            vmem_limit_bytes=vmem_limit),
    )(x, wq, wk, wv, attn_nw, cos_t, sin_lo, sin_hi)

    # ---- pass 2: attention + wo + residual + SwiGLU FFN + residual ----
    attn_kernel = functools.partial(
        attn_ffn_kernel, n_heads=n_heads, n_kv_heads=n_kv_heads,
        head_dim=head_dim, eps=eps)
    out = pl.pallas_call(
        attn_kernel,
        out_shape=jax.ShapeDtypeStruct((B, S, D), f32),
        grid=(B, S // tq, hidden // ffn_chunk),
        in_specs=[
            pl.BlockSpec((1, tq, D), lambda b, q, c: (b, q, 0)),      # x (residual)
            pl.BlockSpec((1, tq, Dq), lambda b, q, c: (b, q, 0)),     # xq (roped)
            pl.BlockSpec((1, S, Dkv), lambda b, q, c: (b, 0, 0)),     # xk (full S)
            pl.BlockSpec((1, S, Dkv), lambda b, q, c: (b, 0, 0)),     # xv (full S)
            resident((Dq, D)),                                        # wo
            resident((1, D)),                                         # ffn norm
            pl.BlockSpec((D, ffn_chunk), lambda b, q, c: (0, c)),     # w1 chunk
            pl.BlockSpec((D, ffn_chunk), lambda b, q, c: (0, c)),     # w3 chunk
            pl.BlockSpec((ffn_chunk, D), lambda b, q, c: (c, 0)),     # w2 chunk
        ],
        out_specs=pl.BlockSpec((1, tq, D), lambda b, q, c: (b, q, 0)),
        scratch_shapes=[pltpu.VMEM((tq, D), f32),     # h_res + FFN accumulator
                        pltpu.VMEM((tq, D), bf16)],   # ffn-normed activations
        compiler_params=pltpu.CompilerParams(
            dimension_semantics=("parallel", "parallel", "arbitrary"),
            vmem_limit_bytes=vmem_limit),
    )(x, xq, xk, xv, wo, ffn_nw, w1, w3, w2)
    return out


# ------------------------------ pure-JAX reference ------------------------------

def ref_encoder_block(x, p, cos, sin, *, n_heads, n_kv_heads, head_dim, eps):
    def rmsnorm(v, w):
        return w * (v * jax.lax.rsqrt(jnp.mean(v * v, -1, keepdims=True) + eps))

    def rope(v):  # v: (B,S,H,Dh), interleaved complex pairs (PyTorch layout)
        B, S, H, Dh = v.shape
        vr = v.reshape(B, S, H, Dh // 2, 2)
        xr, xi = vr[..., 0], vr[..., 1]
        c, s = cos[None, :, None, :], sin[None, :, None, :]
        return jnp.stack([xr * c - xi * s, xr * s + xi * c],
                         axis=-1).reshape(B, S, H, Dh)

    B, S, D = x.shape
    n_rep = n_heads // n_kv_heads
    xn = rmsnorm(x, p['attn_norm'])
    xq = (xn @ p['wq']).reshape(B, S, n_heads, head_dim)
    xk = (xn @ p['wk']).reshape(B, S, n_kv_heads, head_dim)
    xv = (xn @ p['wv']).reshape(B, S, n_kv_heads, head_dim)
    xq, xk = rope(xq), rope(xk)
    keys = jnp.repeat(xk, n_rep, axis=2)
    vals = jnp.repeat(xv, n_rep, axis=2)
    q, k, v = (t.transpose(0, 2, 1, 3) for t in (xq, keys, vals))
    s = (q @ k.transpose(0, 1, 3, 2)) / math.sqrt(head_dim)
    a = jax.nn.softmax(s, axis=-1)
    o = (a @ v).transpose(0, 2, 1, 3).reshape(B, S, D)
    h = x + o @ p['wo']
    hn = rmsnorm(h, p['ffn_norm'])
    ff = (jax.nn.silu(hn @ p['w1']) * (hn @ p['w3'])) @ p['w2']
    return h + ff


# ------------------------------------ main ---------------------------------------

if __name__ == "__main__":
    # Small ModelArgs-consistent shapes, chosen lane-aligned (head_dim = 128)
    # so per-head slices / RoPE shifts / wo row slices are unmasked ops.
    B, S = 2, 16
    n_heads, n_kv_heads = 2, 1
    dim = 256
    head_dim = dim // n_heads                  # 128
    multiple_of = 256
    hidden = int(2 * (4 * dim) / 3)
    hidden = multiple_of * ((hidden + multiple_of - 1) // multiple_of)   # 768
    eps = 1e-5
    start_pos = 0                              # zero cache -> no history, no mask

    key = jax.random.PRNGKey(0)
    ks = jax.random.split(key, 10)
    sc = 0.05
    params = {
        'wq': sc * jax.random.normal(ks[0], (dim, n_heads * head_dim), jnp.float32),
        'wk': sc * jax.random.normal(ks[1], (dim, n_kv_heads * head_dim), jnp.float32),
        'wv': sc * jax.random.normal(ks[2], (dim, n_kv_heads * head_dim), jnp.float32),
        'wo': sc * jax.random.normal(ks[3], (n_heads * head_dim, dim), jnp.float32),
        'w1': sc * jax.random.normal(ks[4], (dim, hidden), jnp.float32),
        'w2': sc * jax.random.normal(ks[5], (hidden, dim), jnp.float32),
        'w3': sc * jax.random.normal(ks[6], (dim, hidden), jnp.float32),
        'attn_norm': 1.0 + 0.1 * jax.random.normal(ks[7], (dim,), jnp.float32),
        'ffn_norm': 1.0 + 0.1 * jax.random.normal(ks[8], (dim,), jnp.float32),
    }
    x = jax.random.normal(ks[9], (B, dim * 0 + S, dim), jnp.float32)

    def run(single_buffer):
        return encoder_block(x, params, n_heads=n_heads, n_kv_heads=n_kv_heads,
                             head_dim=head_dim, eps=eps, start_pos=start_pos,
                             q_tile=8, single_buffer_weights=single_buffer)

    try:
        out = jax.block_until_ready(run(True))
    except Exception:
        # Fallback if this JAX build rejects single-buffered weight BlockSpecs.
        out = jax.block_until_ready(run(False))

    _, _, _, cos_h, sin_h = rope_tables(S, head_dim, n_heads, start_pos=start_pos)
    ref = ref_encoder_block(x, params, cos_h, sin_h, n_heads=n_heads,
                            n_kv_heads=n_kv_heads, head_dim=head_dim, eps=eps)
    ref = jax.block_until_ready(ref)

    # Tolerance accounts for bf16 MXU operands / bf16 Q,K,V in the kernel path.
    np.testing.assert_allclose(np.asarray(out), np.asarray(ref),
                               rtol=2e-2, atol=2e-2)
    print("KERNEL_OK")
</pallas_src>

<mosaic_0001>
module attributes {stable_mosaic.version = 11 : i64} {
  func.func @qkv_rope_kernel(%arg0: i32, %arg1: i32, %arg2: memref<1x8x256xf32, #tpu.memory_space<vmem>>, %arg3: memref<256x256xbf16, #tpu.memory_space<vmem>>, %arg4: memref<256x128xbf16, #tpu.memory_space<vmem>>, %arg5: memref<256x128xbf16, #tpu.memory_space<vmem>>, %arg6: memref<1x256xf32, #tpu.memory_space<vmem>>, %arg7: memref<8x256xf32, #tpu.memory_space<vmem>>, %arg8: memref<8x256xf32, #tpu.memory_space<vmem>>, %arg9: memref<8x256xf32, #tpu.memory_space<vmem>>, %arg10: memref<1x8x256xbf16, #tpu.memory_space<vmem>>, %arg11: memref<1x8x128xbf16, #tpu.memory_space<vmem>>, %arg12: memref<1x8x128xbf16, #tpu.memory_space<vmem>>) attributes {dimension_semantics = [#tpu.dimension_semantics<parallel>, #tpu.dimension_semantics<parallel>], iteration_bounds = array<i64: 2, 2>, scalar_prefetch = 0 : i64, scratch_operands = 0 : i64, tpu.core_type = #tpu.core_type<tc>, window_params = [{transform_indices = @transform_0, window_bounds = array<i64: 1, 8, 256>}, {pipeline_mode = #tpu.pipeline_mode<synchronous>, transform_indices = @transform_1, window_bounds = array<i64: 256, 256>}, {pipeline_mode = #tpu.pipeline_mode<synchronous>, transform_indices = @transform_2, window_bounds = array<i64: 256, 128>}, {pipeline_mode = #tpu.pipeline_mode<synchronous>, transform_indices = @transform_3, window_bounds = array<i64: 256, 128>}, {pipeline_mode = #tpu.pipeline_mode<synchronous>, transform_indices = @transform_4, window_bounds = array<i64: 1, 256>}, {transform_indices = @transform_5, window_bounds = array<i64: 8, 256>}, {transform_indices = @transform_6, window_bounds = array<i64: 8, 256>}, {transform_indices = @transform_7, window_bounds = array<i64: 8, 256>}, {transform_indices = @transform_8, window_bounds = array<i64: 1, 8, 256>}, {transform_indices = @transform_9, window_bounds = array<i64: 1, 8, 128>}, {transform_indices = @transform_10, window_bounds = array<i64: 1, 8, 128>}]} {
    %c0 = arith.constant 0 : index
    %c0_0 = arith.constant 0 : index
    %c0_1 = arith.constant 0 : index
    %0 = vector.load %arg2[%c0, %c0_0, %c0_1] : memref<1x8x256xf32, #tpu.memory_space<vmem>>, vector<1x8x256xf32>
    %1 = vector.shape_cast %0 : vector<1x8x256xf32> to vector<8x256xf32>
    %c0_2 = arith.constant 0 : index
    %c0_3 = arith.constant 0 : index
    %2 = vector.load %arg6[%c0_2, %c0_3] : memref<1x256xf32, #tpu.memory_space<vmem>>, vector<1x256xf32>
    %3 = arith.mulf %1, %1 : vector<8x256xf32>
    %cst = arith.constant dense<0.000000e+00> : vector<8xf32>
    %4 = vector.multi_reduction <add>, %3, %cst [1] : vector<8x256xf32> to vector<8xf32>
    %5 = vector.shape_cast %4 : vector<8xf32> to vector<8x1xf32>
    %cst_4 = arith.constant 2.560000e+02 : f32
    %6 = vector.broadcast %cst_4 : f32 to vector<8x1xf32>
    %7 = arith.divf %5, %6 : vector<8x1xf32>
    %cst_5 = arith.constant 9.99999974E-6 : f32
    %8 = vector.broadcast %cst_5 : f32 to vector<8x1xf32>
    %9 = arith.addf %7, %8 : vector<8x1xf32>
    %10 = math.rsqrt %9 : vector<8x1xf32>
    %11 = vector.broadcast %10 : vector<8x1xf32> to vector<8x256xf32>
    %12 = arith.mulf %1, %11 : vector<8x256xf32>
    %13 = vector.broadcast %2 : vector<1x256xf32> to vector<8x256xf32>
    %14 = arith.mulf %13, %12 : vector<8x256xf32>
    %15 = arith.truncf %14 : vector<8x256xf32> to vector<8x256xbf16>
    %c0_6 = arith.constant 0 : index
    %c0_7 = arith.constant 0 : index
    %16 = vector.load %arg3[%c0_6, %c0_7] : memref<256x256xbf16, #tpu.memory_space<vmem>>, vector<256x256xbf16>
    %cst_8 = arith.constant dense<0.000000e+00> : vector<8x256xf32>
    %17 = tpu.matmul %15, %16, %cst_8 {dimension_numbers = #tpu.dot_dimension_numbers<[1], [0], [0], [1], [0, 0, 1, 1], [], []>} : vector<8x256xbf16>, vector<256x256xbf16>, vector<8x256xf32> -> vector<8x256xf32>
    %c0_9 = arith.constant 0 : index
    %c0_10 = arith.constant 0 : index
    %18 = vector.load %arg4[%c0_9, %c0_10] : memref<256x128xbf16, #tpu.memory_space<vmem>>, vector<256x128xbf16>
    %cst_11 = arith.constant dense<0.000000e+00> : vector<8x128xf32>
    %19 = tpu.matmul %15, %18, %cst_11 {dimension_numbers = #tpu.dot_dimension_numbers<[1], [0], [0], [1], [0, 0, 1, 1], [], []>} : vector<8x256xbf16>, vector<256x128xbf16>, vector<8x128xf32> -> vector<8x128xf32>
    %c0_12 = arith.constant 0 : index
    %c0_13 = arith.constant 0 : index
    %20 = vector.load %arg5[%c0_12, %c0_13] : memref<256x128xbf16, #tpu.memory_space<vmem>>, vector<256x128xbf16>
    %cst_14 = arith.constant dense<0.000000e+00> : vector<8x128xf32>
    %21 = tpu.matmul %15, %20, %cst_14 {dimension_numbers = #tpu.dot_dimension_numbers<[1], [0], [0], [1], [0, 0, 1, 1], [], []>} : vector<8x256xbf16>, vector<256x128xbf16>, vector<8x128xf32> -> vector<8x128xf32>
    %c0_15 = arith.constant 0 : index
    %c0_16 = arith.constant 0 : index
    %22 = vector.load %arg7[%c0_15, %c0_16] : memref<8x256xf32, #tpu.memory_space<vmem>>, vector<8x256xf32>
    %c0_17 = arith.constant 0 : index
    %c0_18 = arith.constant 0 : index
    %23 = vector.load %arg8[%c0_17, %c0_18] : memref<8x256xf32, #tpu.memory_space<vmem>>, vector<8x256xf32>
    %c0_19 = arith.constant 0 : index
    %c0_20 = arith.constant 0 : index
    %24 = vector.load %arg9[%c0_19, %c0_20] : memref<8x256xf32, #tpu.memory_space<vmem>>, vector<8x256xf32>
    %c192_i32 = arith.constant 192 : i32
    %25 = tpu.dynamic_rotate %17 by %c192_i32 dim 1 : vector<8x256xf32>, i32 -> vector<8x256xf32>
    %c64_i32 = arith.constant 64 : i32
    %26 = tpu.dynamic_rotate %17 by %c64_i32 dim 1 : vector<8x256xf32>, i32 -> vector<8x256xf32>
    %27 = arith.mulf %17, %22 : vector<8x256xf32>
    %28 = arith.mulf %25, %23 : vector<8x256xf32>
    %29 = arith.addf %27, %28 : vector<8x256xf32>
    %30 = arith.mulf %26, %24 : vector<8x256xf32>
    %31 = arith.addf %29, %30 : vector<8x256xf32>
    %32 = arith.truncf %31 : vector<8x256xf32> to vector<8x256xbf16>
    %c0_21 = arith.constant 0 : index
    %c0_22 = arith.constant 0 : index
    %c0_23 = arith.constant 0 : index
    %33 = vector.load %arg10[%c0_21, %c0_22, %c0_23] : memref<1x8x256xbf16, #tpu.memory_space<vmem>>, vector<1x8x256xbf16>
    %34 = vector.shape_cast %33 : vector<1x8x256xbf16> to vector<8x256xbf16>
    %35 = vector.shape_cast %32 : vector<8x256xbf16> to vector<1x8x256xbf16>
    tpu.vector_store %arg10[%c0_21, %c0_22, %c0_23], %35 {strides = array<i32>} : memref<1x8x256xbf16, #tpu.memory_space<vmem>>, vector<1x8x256xbf16>,
    %c64_i32_24 = arith.constant 64 : i32
    %36 = tpu.dynamic_rotate %19 by %c64_i32_24 dim 1 : vector<8x128xf32>, i32 -> vector<8x128xf32>
    %c64_i32_25 = arith.constant 64 : i32
    %37 = tpu.dynamic_rotate %19 by %c64_i32_25 dim 1 : vector<8x128xf32>, i32 -> vector<8x128xf32>
    %38 = vector.extract_strided_slice %22 {offsets = [0, 0], sizes = [8, 128], strides = [1, 1]} : vector<8x256xf32> to vector<8x128xf32>
    %39 = arith.mulf %19, %38 : vector<8x128xf32>
    %40 = vector.extract_strided_slice %23 {offsets = [0, 0], sizes = [8, 128], strides = [1, 1]} : vector<8x256xf32> to vector<8x128xf32>
    %41 = arith.mulf %36, %40 : vector<8x128xf32>
    %42 = arith.addf %39, %41 : vector<8x128xf32>
    %43 = vector.extract_strided_slice %24 {offsets = [0, 0], sizes = [8, 128], strides = [1, 1]} : vector<8x256xf32> to vector<8x128xf32>
    %44 = arith.mulf %37, %43 : vector<8x128xf32>
    %45 = arith.addf %42, %44 : vector<8x128xf32>
    %46 = arith.truncf %45 : vector<8x128xf32> to vector<8x128xbf16>
    %c0_26 = arith.constant 0 : index
    %c0_27 = arith.constant 0 : index
    %c0_28 = arith.constant 0 : index
    %47 = vector.load %arg11[%c0_26, %c0_27, %c0_28] : memref<1x8x128xbf16, #tpu.memory_space<vmem>>, vector<1x8x128xbf16>
    %48 = vector.shape_cast %47 : vector<1x8x128xbf16> to vector<8x128xbf16>
    %49 = vector.shape_cast %46 : vector<8x128xbf16> to vector<1x8x128xbf16>
    tpu.vector_store %arg11[%c0_26, %c0_27, %c0_28], %49 {strides = array<i32>} : memref<1x8x128xbf16, #tpu.memory_space<vmem>>, vector<1x8x128xbf16>,
    %50 = arith.truncf %21 : vector<8x128xf32> to vector<8x128xbf16>
    %c0_29 = arith.constant 0 : index
    %c0_30 = arith.constant 0 : index
    %c0_31 = arith.constant 0 : index
    %51 = vector.load %arg12[%c0_29, %c0_30, %c0_31] : memref<1x8x128xbf16, #tpu.memory_space<vmem>>, vector<1x8x128xbf16>
    %52 = vector.shape_cast %51 : vector<1x8x128xbf16> to vector<8x128xbf16>
    %53 = vector.shape_cast %50 : vector<8x128xbf16> to vector<1x8x128xbf16>
    tpu.vector_store %arg12[%c0_29, %c0_30, %c0_31], %53 {strides = array<i32>} : memref<1x8x128xbf16, #tpu.memory_space<vmem>>, vector<1x8x128xbf16>,
    return
  }
  func.func @transform_0(%arg0: i32, %arg1: i32) -> (i32, i32, i32) {
    %c0_i32 = arith.constant 0 : i32
    %c0_i32_0 = arith.constant 0 : i32
    return %arg0, %arg1, %c0_i32 : i32, i32, i32
  }
  func.func @transform_1(%arg0: i32, %arg1: i32) -> (i32, i32) {
    %c0_i32 = arith.constant 0 : i32
    %c0_i32_0 = arith.constant 0 : i32
    %c0_i32_1 = arith.constant 0 : i32
    return %c0_i32, %c0_i32_0 : i32, i32
  }
  func.func @transform_2(%arg0: i32, %arg1: i32) -> (i32, i32) {
    %c0_i32 = arith.constant 0 : i32
    %c0_i32_0 = arith.constant 0 : i32
    %c0_i32_1 = arith.constant 0 : i32
    return %c0_i32, %c0_i32_0 : i32, i32
  }
  func.func @transform_3(%arg0: i32, %arg1: i32) -> (i32, i32) {
    %c0_i32 = arith.constant 0 : i32
    %c0_i32_0 = arith.constant 0 : i32
    %c0_i32_1 = arith.constant 0 : i32
    return %c0_i32, %c0_i32_0 : i32, i32
  }
  func.func @transform_4(%arg0: i32, %arg1: i32) -> (i32, i32) {
    %c0_i32 = arith.constant 0 : i32
    %c0_i32_0 = arith.constant 0 : i32
    %c0_i32_1 = arith.constant 0 : i32
    return %c0_i32, %c0_i32_0 : i32, i32
  }
  func.func @transform_5(%arg0: i32, %arg1: i32) -> (i32, i32) {
    %c0_i32 = arith.constant 0 : i32
    %c0_i32_0 = arith.constant 0 : i32
    return %arg1, %c0_i32 : i32, i32
  }
  func.func @transform_6(%arg0: i32, %arg1: i32) -> (i32, i32) {
    %c0_i32 = arith.constant 0 : i32
    %c0_i32_0 = arith.constant 0 : i32
    return %arg1, %c0_i32 : i32, i32
  }
  func.func @transform_7(%arg0: i32, %arg1: i32) -> (i32, i32) {
    %c0_i32 = arith.constant 0 : i32
    %c0_i32_0 = arith.constant 0 : i32
    return %arg1, %c0_i32 : i32, i32
  }
  func.func @transform_8(%arg0: i32, %arg1: i32) -> (i32, i32, i32) {
    %c0_i32 = arith.constant 0 : i32
    %c0_i32_0 = arith.constant 0 : i32
    return %arg0, %arg1, %c0_i32 : i32, i32, i32
  }
  func.func @transform_9(%arg0: i32, %arg1: i32) -> (i32, i32, i32) {
    %c0_i32 = arith.constant 0 : i32
    %c0_i32_0 = arith.constant 0 : i32
    return %arg0, %arg1, %c0_i32 : i32, i32, i32
  }
  func.func @transform_10(%arg0: i32, %arg1: i32) -> (i32, i32, i32) {
    %c0_i32 = arith.constant 0 : i32
    %c0_i32_0 = arith.constant 0 : i32
    return %arg0, %arg1, %c0_i32 : i32, i32, i32
  }
}

module attributes {stable_mosaic.version = 11 : i64} {
  func.func @qkv_rope_kernel(%arg0: i32, %arg1: i32, %arg2: memref<1x8x256xf32, #tpu.memory_space<vmem>>, %arg3: memref<256x256xbf16, #tpu.memory_space<vmem>>, %arg4: memref<256x128xbf16, #tpu.memory_space<vmem>>, %arg5: memref<256x128xbf16, #tpu.memory_space<vmem>>, %arg6: memref<1x256xf32, #tpu.memory_space<vmem>>, %arg7: memref<8x256xf32, #tpu.memory_space<vmem>>, %arg8: memref<8x256xf32, #tpu.memory_space<vmem>>, %arg9: memref<8x256xf32, #tpu.memory_space<vmem>>, %arg10: memref<1x8x256xbf16, #tpu.memory_space<vmem>>, %arg11: memref<1x8x128xbf16, #tpu.memory_space<vmem>>, %arg12: memref<1x8x128xbf16, #tpu.memory_space<vmem>>) attributes {dimension_semantics = [#tpu.dimension_semantics<parallel>, #tpu.dimension_semantics<parallel>], iteration_bounds = array<i64: 2, 2>, scalar_prefetch = 0 : i64, scratch_operands = 0 : i64, tpu.core_type = #tpu.core_type<tc>, window_params = [{transform_indices = @transform_0, window_bounds = array<i64: 1, 8, 256>}, {pipeline_mode = #tpu.pipeline_mode<synchronous>, transform_indices = @transform_1, window_bounds = array<i64: 256, 256>}, {pipeline_mode = #tpu.pipeline_mode<synchronous>, transform_indices = @transform_2, window_bounds = array<i64: 256, 128>}, {pipeline_mode = #tpu.pipeline_mode<synchronous>, transform_indices = @transform_3, window_bounds = array<i64: 256, 128>}, {pipeline_mode = #tpu.pipeline_mode<synchronous>, transform_indices = @transform_4, window_bounds = array<i64: 1, 256>}, {transform_indices = @transform_5, window_bounds = array<i64: 8, 256>}, {transform_indices = @transform_6, window_bounds = array<i64: 8, 256>}, {transform_indices = @transform_7, window_bounds = array<i64: 8, 256>}, {transform_indices = @transform_8, window_bounds = array<i64: 1, 8, 256>}, {transform_indices = @transform_9, window_bounds = array<i64: 1, 8, 128>}, {transform_indices = @transform_10, window_bounds = array<i64: 1, 8, 128>}]} {
    %c0 = arith.constant 0 : index
    %c0_0 = arith.constant 0 : index
    %c0_1 = arith.constant 0 : index
    %0 = vector.load %arg2[%c0, %c0_0, %c0_1] : memref<1x8x256xf32, #tpu.memory_space<vmem>>, vector<1x8x256xf32>
    %1 = vector.shape_cast %0 : vector<1x8x256xf32> to vector<8x256xf32>
    %c0_2 = arith.constant 0 : index
    %c0_3 = arith.constant 0 : index
    %2 = vector.load %arg6[%c0_2, %c0_3] : memref<1x256xf32, #tpu.memory_space<vmem>>, vector<1x256xf32>
    %3 = arith.mulf %1, %1 : vector<8x256xf32>
    %cst = arith.constant dense<0.000000e+00> : vector<8xf32>
    %4 = vector.multi_reduction <add>, %3, %cst [1] : vector<8x256xf32> to vector<8xf32>
    %5 = vector.shape_cast %4 : vector<8xf32> to vector<8x1xf32>
    %cst_4 = arith.constant 2.560000e+02 : f32
    %6 = vector.broadcast %cst_4 : f32 to vector<8x1xf32>
    %7 = arith.divf %5, %6 : vector<8x1xf32>
    %cst_5 = arith.constant 9.99999974E-6 : f32
    %8 = vector.broadcast %cst_5 : f32 to vector<8x1xf32>
    %9 = arith.addf %7, %8 : vector<8x1xf32>
    %10 = math.rsqrt %9 : vector<8x1xf32>
    %11 = vector.broadcast %10 : vector<8x1xf32> to vector<8x256xf32>
    %12 = arith.mulf %1, %11 : vector<8x256xf32>
    %13 = vector.broadcast %2 : vector<1x256xf32> to vector<8x256xf32>
    %14 = arith.mulf %13, %12 : vector<8x256xf32>
    %15 = arith.truncf %14 : vector<8x256xf32> to vector<8x256xbf16>
    %c0_6 = arith.constant 0 : index
    %c0_7 = arith.constant 0 : index
    %16 = vector.load %arg3[%c0_6, %c0_7] : memref<256x256xbf16, #tpu.memory_space<vmem>>, vector<256x256xbf16>
    %cst_8 = arith.constant dense<0.000000e+00> : vector<8x256xf32>
    %17 = tpu.matmul %15, %16, %cst_8 {dimension_numbers = #tpu.dot_dimension_numbers<[1], [0], [0], [1], [0, 0, 1, 1], [], []>} : vector<8x256xbf16>, vector<256x256xbf16>, vector<8x256xf32> -> vector<8x256xf32>
    %c0_9 = arith.constant 0 : index
    %c0_10 = arith.constant 0 : index
    %18 = vector.load %arg4[%c0_9, %c0_10] : memref<256x128xbf16, #tpu.memory_space<vmem>>, vector<256x128xbf16>
    %cst_11 = arith.constant dense<0.000000e+00> : vector<8x128xf32>
    %19 = tpu.matmul %15, %18, %cst_11 {dimension_numbers = #tpu.dot_dimension_numbers<[1], [0], [0], [1], [0, 0, 1, 1], [], []>} : vector<8x256xbf16>, vector<256x128xbf16>, vector<8x128xf32> -> vector<8x128xf32>
    %c0_12 = arith.constant 0 : index
    %c0_13 = arith.constant 0 : index
    %20 = vector.load %arg5[%c0_12, %c0_13] : memref<256x128xbf16, #tpu.memory_space<vmem>>, vector<256x128xbf16>
    %cst_14 = arith.constant dense<0.000000e+00> : vector<8x128xf32>
    %21 = tpu.matmul %15, %20, %cst_14 {dimension_numbers = #tpu.dot_dimension_numbers<[1], [0], [0], [1], [0, 0, 1, 1], [], []>} : vector<8x256xbf16>, vector<256x128xbf16>, vector<8x128xf32> -> vector<8x128xf32>
    %c0_15 = arith.constant 0 : index
    %c0_16 = arith.constant 0 : index
    %22 = vector.load %arg7[%c0_15, %c0_16] : memref<8x256xf32, #tpu.memory_space<vmem>>, vector<8x256xf32>
    %c0_17 = arith.constant 0 : index
    %c0_18 = arith.constant 0 : index
    %23 = vector.load %arg8[%c0_17, %c0_18] : memref<8x256xf32, #tpu.memory_space<vmem>>, vector<8x256xf32>
    %c0_19 = arith.constant 0 : index
    %c0_20 = arith.constant 0 : index
    %24 = vector.load %arg9[%c0_19, %c0_20] : memref<8x256xf32, #tpu.memory_space<vmem>>, vector<8x256xf32>
    %c192_i32 = arith.constant 192 : i32
    %25 = tpu.dynamic_rotate %17 by %c192_i32 dim 1 : vector<8x256xf32>, i32 -> vector<8x256xf32>
    %c64_i32 = arith.constant 64 : i32
    %26 = tpu.dynamic_rotate %17 by %c64_i32 dim 1 : vector<8x256xf32>, i32 -> vector<8x256xf32>
    %27 = arith.mulf %17, %22 : vector<8x256xf32>
    %28 = arith.mulf %25, %23 : vector<8x256xf32>
    %29 = arith.addf %27, %28 : vector<8x256xf32>
    %30 = arith.mulf %26, %24 : vector<8x256xf32>
    %31 = arith.addf %29, %30 : vector<8x256xf32>
    %32 = arith.truncf %31 : vector<8x256xf32> to vector<8x256xbf16>
    %c0_21 = arith.constant 0 : index
    %c0_22 = arith.constant 0 : index
    %c0_23 = arith.constant 0 : index
    %33 = vector.load %arg10[%c0_21, %c0_22, %c0_23] : memref<1x8x256xbf16, #tpu.memory_space<vmem>>, vector<1x8x256xbf16>
    %34 = vector.shape_cast %33 : vector<1x8x256xbf16> to vector<8x256xbf16>
    %35 = vector.shape_cast %32 : vector<8x256xbf16> to vector<1x8x256xbf16>
    tpu.vector_store %arg10[%c0_21, %c0_22, %c0_23], %35 {strides = array<i32>} : memref<1x8x256xbf16, #tpu.memory_space<vmem>>, vector<1x8x256xbf16>,
    %c64_i32_24 = arith.constant 64 : i32
    %36 = tpu.dynamic_rotate %19 by %c64_i32_24 dim 1 : vector<8x128xf32>, i32 -> vector<8x128xf32>
    %c64_i32_25 = arith.constant 64 : i32
    %37 = tpu.dynamic_rotate %19 by %c64_i32_25 dim 1 : vector<8x128xf32>, i32 -> vector<8x128xf32>
    %38 = vector.extract_strided_slice %22 {offsets = [0, 0], sizes = [8, 128], strides = [1, 1]} : vector<8x256xf32> to vector<8x128xf32>
    %39 = arith.mulf %19, %38 : vector<8x128xf32>
    %40 = vector.extract_strided_slice %23 {offsets = [0, 0], sizes = [8, 128], strides = [1, 1]} : vector<8x256xf32> to vector<8x128xf32>
    %41 = arith.mulf %36, %40 : vector<8x128xf32>
    %42 = arith.addf %39, %41 : vector<8x128xf32>
    %43 = vector.extract_strided_slice %24 {offsets = [0, 0], sizes = [8, 128], strides = [1, 1]} : vector<8x256xf32> to vector<8x128xf32>
    %44 = arith.mulf %37, %43 : vector<8x128xf32>
    %45 = arith.addf %42, %44 : vector<8x128xf32>
    %46 = arith.truncf %45 : vector<8x128xf32> to vector<8x128xbf16>
    %c0_26 = arith.constant 0 : index
    %c0_27 = arith.constant 0 : index
    %c0_28 = arith.constant 0 : index
    %47 = vector.load %arg11[%c0_26, %c0_27, %c0_28] : memref<1x8x128xbf16, #tpu.memory_space<vmem>>, vector<1x8x128xbf16>
    %48 = vector.shape_cast %47 : vector<1x8x128xbf16> to vector<8x128xbf16>
    %49 = vector.shape_cast %46 : vector<8x128xbf16> to vector<1x8x128xbf16>
    tpu.vector_store %arg11[%c0_26, %c0_27, %c0_28], %49 {strides = array<i32>} : memref<1x8x128xbf16, #tpu.memory_space<vmem>>, vector<1x8x128xbf16>,
    %50 = arith.truncf %21 : vector<8x128xf32> to vector<8x128xbf16>
    %c0_29 = arith.constant 0 : index
    %c0_30 = arith.constant 0 : index
    %c0_31 = arith.constant 0 : index
    %51 = vector.load %arg12[%c0_29, %c0_30, %c0_31] : memref<1x8x128xbf16, #tpu.memory_space<vmem>>, vector<1x8x128xbf16>
    %52 = vector.shape_cast %51 : vector<1x8x128xbf16> to vector<8x128xbf16>
    %53 = vector.shape_cast %50 : vector<8x128xbf16> to vector<1x8x128xbf16>
    tpu.vector_store %arg12[%c0_29, %c0_30, %c0_31], %53 {strides = array<i32>} : memref<1x8x128xbf16, #tpu.memory_space<vmem>>, vector<1x8x128xbf16>,
    return
  }
  func.func @transform_0(%arg0: i32, %arg1: i32) -> (i32, i32, i32) {
    %c0_i32 = arith.constant 0 : i32
    %c0_i32_0 = arith.constant 0 : i32
    return %arg0, %arg1, %c0_i32 : i32, i32, i32
  }
  func.func @transform_1(%arg0: i32, %arg1: i32) -> (i32, i32) {
    %c0_i32 = arith.constant 0 : i32
    %c0_i32_0 = arith.constant 0 : i32
    %c0_i32_1 = arith.constant 0 : i32
    return %c0_i32, %c0_i32_0 : i32, i32
  }
  func.func @transform_2(%arg0: i32, %arg1: i32) -> (i32, i32) {
    %c0_i32 = arith.constant 0 : i32
    %c0_i32_0 = arith.constant 0 : i32
    %c0_i32_1 = arith.constant 0 : i32
    return %c0_i32, %c0_i32_0 : i32, i32
  }
  func.func @transform_3(%arg0: i32, %arg1: i32) -> (i32, i32) {
    %c0_i32 = arith.constant 0 : i32
    %c0_i32_0 = arith.constant 0 : i32
    %c0_i32_1 = arith.constant 0 : i32
    return %c0_i32, %c0_i32_0 : i32, i32
  }
  func.func @transform_4(%arg0: i32, %arg1: i32) -> (i32, i32) {
    %c0_i32 = arith.constant 0 : i32
    %c0_i32_0 = arith.constant 0 : i32
    %c0_i32_1 = arith.constant 0 : i32
    return %c0_i32, %c0_i32_0 : i32, i32
  }
  func.func @transform_5(%arg0: i32, %arg1: i32) -> (i32, i32) {
    %c0_i32 = arith.constant 0 : i32
    %c0_i32_0 = arith.constant 0 : i32
    return %arg1, %c0_i32 : i32, i32
  }
  func.func @transform_6(%arg0: i32, %arg1: i32) -> (i32, i32) {
    %c0_i32 = arith.constant 0 : i32
    %c0_i32_0 = arith.constant 0 : i32
    return %arg1, %c0_i32 : i32, i32
  }
  func.func @transform_7(%arg0: i32, %arg1: i32) -> (i32, i32) {
    %c0_i32 = arith.constant 0 : i32
    %c0_i32_0 = arith.constant 0 : i32
    return %arg1, %c0_i32 : i32, i32
  }
  func.func @transform_8(%arg0: i32, %arg1: i32) -> (i32, i32, i32) {
    %c0_i32 = arith.constant 0 : i32
    %c0_i32_0 = arith.constant 0 : i32
    return %arg0, %arg1, %c0_i32 : i32, i32, i32
  }
  func.func @transform_9(%arg0: i32, %arg1: i32) -> (i32, i32, i32) {
    %c0_i32 = arith.constant 0 : i32
    %c0_i32_0 = arith.constant 0 : i32
    return %arg0, %arg1, %c0_i32 : i32, i32, i32
  }
  func.func @transform_10(%arg0: i32, %arg1: i32) -> (i32, i32, i32) {
    %c0_i32 = arith.constant 0 : i32
    %c0_i32_0 = arith.constant 0 : i32
    return %arg0, %arg1, %c0_i32 : i32, i32, i32
  }
}

</mosaic_0001>

<bundles_post_ra>
// kernel: tpu_custom_call.1
= control target key start
LH: loop header
LB: loop body
LE: loop exit
PB: predicated region body
PF: predicated region fallthrough
CT: control target
= control target key end

     0   :  { %s2956_s0 = inlined_call_operand.hbm [shape: f32[2,16,256], index: 0, kind: input, shape index: {}]   ;;  %s2957_s1 = inlined_call_operand.hbm [shape: bf16[256,256], index: 1, kind: input, shape index: {}]   ;;  %s2958_s2 = inlined_call_operand.hbm [shape: bf16[256,128], index: 2, kind: input, shape index: {}]   ;;  %s2959_s3 = inlined_call_operand.hbm [shape: bf16[256,128], index: 3, kind: input, shape index: {}]   ;;  %s2960_s4 = inlined_call_operand.vmem [shape: f32[1,256], index: 4, kind: input, shape index: {}]   ;;  %s2961_s5 = inlined_call_operand.hbm [shape: f32[16,256], index: 5, kind: input, shape index: {}]   ;;  %s2962_s6 = inlined_call_operand.hbm [shape: f32[16,256], index: 6, kind: input, shape index: {}]   ;;  %s2963_s7 = inlined_call_operand.hbm [shape: f32[16,256], index: 7, kind: input, shape index: {}]   ;;  %s2964_s8 = inlined_call_operand.hbm [shape: bf16[2,16,256], index: 8, kind: output, shape index: {0}]   ;;  %s2965_s9 = inlined_call_operand.hbm [shape: bf16[2,16,128], index: 9, kind: output, shape index: {1}]   ;;  %s2966_s10 = inlined_call_operand.hbm [shape: bf16[2,16,128], index: 10, kind: output, shape index: {2}]  }
   0x1   :  { %3000 = sst [smem:[#allocation37_spill]] %s2956_s0 }
   0x2   :  { %3001 = sst [smem:[#allocation38_spill]] %s2957_s1 }
   0x3   :  { %3002 = sst [smem:[#allocation39_spill]] %s2959_s3 }
   0x4   :  { %3003 = sst [smem:[#allocation40_spill]] %s2960_s4 }
   0x5   :  { %3004 = sst [smem:[#allocation41_spill]] %s2961_s5 }
   0x6   :  { %3005 = sst [smem:[#allocation42_spill]] %s2962_s6 }
   0x7   :  { %3006 = sst [smem:[#allocation43_spill]] %s2964_s8 }
   0x8   :  { %3007 = sst [smem:[#allocation44_spill]] %s2965_s9 }
   0x9   :  { %3008 = sst [smem:[#allocation45_spill]] %s2966_s10 }
   0xa   :  { %16 = vsyncpa [#allocation3], 0 }
   0xb   :  { %18 = vsyncpa [#allocation3 + $0x1], 0 }
   0xc   :  { %19 = vsyncpa [#allocation6], 0 }
   0xd   :  { %20 = vsyncpa [#allocation9], 0 }
   0xe   :  { %21 = vsyncpa [#allocation4], 0 }
   0xf   :  { %23 = vsyncpa [#allocation4 + $0x1], 0 }
  0x10   :  { %24 = vsyncpa [#allocation15], 0 }
  0x11   :  { %26 = vsyncpa [#allocation15 + $0x1], 0  ;;  %s2378_s13 = smov 0   ;;  %s2380_s14 = smov 0  }
  0x12   :  { %s2382_s15 = smov 0   ;;  %s2384_s16 = smov 0  }
  0x13   :  { %s2386_s17 = smov 0   ;;  %s2388_s18 = smov 0  }
  0x14   :  { %s2390_s19 = smov 0   ;;  %s2392_s20 = smov 0  }
  0x15   :  { %s2394_s21 = smov 0   ;;  %s2396_s22 = smov 0  }
  0x16   :  { %s2398_s23 = smov 0  }
  0x17 LB: > { %3009 = sst [smem:[#allocation23_spill]] %s2274_s15  ;;  %s2434_s24 = sadd.s32 4294967295, %s2306_s23   ;;  %s2306_s23 = sphi %s2398_s23, %s32_s23   ;;  %s2302_s22 = sphi %s2396_s22, %s3076_s22   ;;  %s2298_s21 = sphi %s2394_s21, %s3075_s21   ;;  %s2294_s20 = sphi %s2392_s20, %s3074_s20   ;;  %s2290_s19 = sphi %s2390_s19, %s3081_s19   ;;  %s2286_s18 = sphi %s2388_s18, %s3072_s18   ;;  %s2282_s17 = sphi %s2386_s17, %s3080_s17   ;;  %s2278_s16 = sphi %s2384_s16, %s3079_s16   ;;  %s2274_s15 = sphi %s2382_s15, %s3070_s15   ;;  %s2270_s14 = sphi %s2380_s14, %s3078_s14   ;;  %s2266_s13 = sphi %s2378_s13, %s3077_s13  }
  0x18   : > { %3010 = sst [smem:[#allocation24_spill]] %s2278_s16  ;;  %s41_s26 = sadd.s32 1, %s2298_s21 }
  0x19   : > { %3011 = sst [smem:[#allocation25_spill]] %s2286_s18  ;;  %s44_s27 = sadd.s32 1, %s2302_s22 }
  0x1a   : > { %3012 = sst [smem:[#allocation26_spill]] %s2290_s19  ;;  %p42_p0 = scmp.ge.s32.totalorder %s41_s26, 2 }
  0x1b   : > { %3013 = sst [smem:[#allocation27_spill]] %s2294_s20  ;;  %s53_s28 = sadd.s32 1, %s2286_s18 }
  0x1c   : > { %3014 = sst [smem:[#allocation28_spill]] %s2298_s21  ;;  %p60_p1 = scmp.ne.s32.totalorder %s2286_s18, %s2282_s17 }
  0x1d   : > { %3015 = sst [smem:[#allocation29_spill]] %s2302_s22  ;;  %p61_p2 = scmp.eq.s32.totalorder %s2306_s23, 0 }
  0x1e   : > { %3016 = sst [smem:[#allocation30_spill]] %s2306_s23  ;;  %s3083_s26 = smov (%p42_p0, %s41_s26), 0 }
  0x1f   : > { %3017 = sst [smem:[#allocation31_spill]] %s3083_s26  ;;  %s3085_s27 = smov (!%p42_p0, %s44_s27), %s2302_s22 }
  0x20   : > { %s49_s29 = ssub.s32 %s2298_s21, %s3083_s26  ;;  %p2453_p3 = por %p61_p2, %p60_p1 }
  0x21   : > { %p46_p4 = scmp.ge.s32.totalorder %s3085_s27, 2  ;;  %p2977_p5 = scmp.ne.s32.totalorder %s2282_s17, %s2278_s16 }
  0x22   : > { %p161_p6 = scmp.eq.s32.totalorder %s49_s29, 0  ;;  %s163_s11 = sadd.s32 1, %s2274_s15 }
  0x23   : > { %s3087_s27 = smov (%p46_p4, %s3085_s27), 0  ;;  %p170_p7 = scmp.ne.s32.totalorder %s2274_s15, %s2270_s14 }
  0x24   : > { %3019 = sst [smem:[#allocation32_spill]] %s3087_s27  ;;  %s48_s25 = ssub.s32 %s2302_s22, %s3087_s27 }
  0x25   : > { %s2463_s12 = scalar_select %p161_p6, %s2274_s15, %s163_s11  }
  0x26   : > { %s50_s26 = sor.u32 %s49_s29, %s48_s25  ;;  %p2473_p10 = por %p170_p7, %p61_p2 }
  0x27   : > { %3020 = sst [smem:[#allocation33_spill]] %s2463_s12  ;;  %p51_p9 = scmp.eq.s32.totalorder %s50_s26, 0 }
  0x28   : > { %p254_p11 = scmp.eq.s32.totalorder %s2434_s24, 3  ;;  %s3022_s9 = sadd.s32 4294967294, %s2306_s23  }
  0x29   : > { %p260_p12 = scmp.eq.s32.totalorder %s3022_s9, 3  ;;  %p1725_p2 = scmp.lt.s32.totalorder %s2306_s23, 4 }
  0x2a   : > { %s2481_s8 = scalar_select %p51_p9, %s2286_s18, %s53_s28  }
  0x2b   : > { %p2486_p13 = por %p254_p11, %p60_p1  ;;  %p2493_p0 = por %p260_p12, %p2977_p5 }
  0x2c   : > { %3023 = sst [smem:[#allocation34_spill]] %s2481_s8  ;;  %s378_s26 = sand.u32 1, %s2306_s23  }
  0x2d   : > { %s3024_s11 = scalar_select %p2486_p13, 1, 0 }
  0x2e   : > { %s3026_s25 = scalar_select %p2493_p0, 1, 0 }
  0x2f   : > { %3025 = sst [smem:[#allocation35_spill]] %s3024_s11  ;;  %s380_s9 = sand.u32 1, %s2286_s18  }
  0x30   : > { %3027 = sst [smem:[#allocation36_spill]] %s3026_s25  ;;  %s1514_s29 = sshll.u32 %s380_s9, 4 }
  0x31   : > { %s1515_s27 = sshll.u32 %s2298_s21, 1  ;;  %s1516_s28 = sshll.u32 %s2302_s22, 2 }
  0x32   : > { %s388_s8 = sadd.s32 %s1516_s28, %s1515_s27  ;;  %s382_s12 = scalar_lea.vmem [#allocation2], %s1514_s29 }
  0x33   : > { %s392_s20 = sshll.u32 %s382_s12, 4  ;;  %s1517_s19 = sshll.u32 %s388_s8, 7  ;;  %s2502_s20 = int_to_ptr.vmem [resolvable:$true] %s392_s20 }
  0x34   : > { %s3028_s0 = sld [smem:[#allocation37_spill]]  ;;  %p2513_p1 = pnand %p1725_p2, %p2453_p3 }
  0x35   : > { %p2521_p4 = pnand %p1725_p2, %p2473_p10  ;;  %s401_s4 = sand.u32 1, %s2274_s15  }
  0x36   : > { %s2528_s27 = scalar_lea.sflag [#allocation3], %s378_s26  ;;  %p1910_p3 = pneg %p2513_p1 }
  0x37   : > { %s3030_s8 = scalar_select %p2521_p4, 1, 0 }
  0x3a   : > { %s2507_s3 = scalar_lea.hbm %s3028_s0, %s1517_s19  ;;  %s2526_s19 = sshll.u32 %s401_s4, 4 }
  0x3b   : > { %s1908_s30 = scalar_lea.hbm %s2507_s3, 256  ;;  %s1913_s11 = scalar_lea.hbm %s3028_s0, 1024 }
  0x3c   : > { %p1909_p6 = scmp.ne.s32.totalorder %s2507_s3, %s1908_s30  ;;  %p1914_p10 = scmp.lt.u32.totalorder %s2507_s3, %s3028_s0 }
  0x3d   : > { %p1915_p11 = scmp.lt.u32.totalorder %s1913_s11, %s1908_s30  ;;  %p1917_p2 = scmp.lt.u32.totalorder %s1908_s30, %s2507_s3 }
  0x3e   : > { %p1911_p7 = pnand %p1910_p3, %p1909_p6 }
  0x3f   : > { %p1916_p12 = por %p1915_p11, %p1914_p10 }
  0x40   : > { %p1912_p9 = pneg %p1911_p7 }
  0x41   : > { %p1918_p8 = por %p1917_p2, %p1916_p12 }
  0x43   : > { %p1919_p5 = pnand %p1918_p8, %p1912_p9 }
  0x45   : > { %1922 = shalt.err (!%p1919_p5)
}
  0x46   : > { %s1923_s26 = scalar_lea.vmem %s2502_s20, 256  ;;  %s2308_s4 = smov [#allocation2]  }
  0x47   : > { %p1924_p6 = scmp.ne.s32.totalorder %s2502_s20, %s1923_s26  ;;  %s1928_s10 = sshll.u32 %s2308_s4, 4  ;;  %s1929_s10 = int_to_ptr.vmem [resolvable:$false] %s1928_s10 }
  0x48   : > { %s1930_s12 = scalar_lea.vmem %s1929_s10, 512  ;;  %p1931_p13 = scmp.lt.s32.totalorder %s2502_s20, %s1929_s10 }
  0x49   : > { %p1926_p7 = pnand %p1924_p6, %p1910_p3  ;;  %p1932_p10 = scmp.lt.s32.totalorder %s1930_s12, %s1923_s26 }
  0x4b   : > { %p1927_p0 = pneg %p1926_p7  ;;  %p1933_p11 = por %p1932_p10, %p1931_p13 }
  0x4d   : > { %p1934_p12 = pnand %p1933_p11, %p1927_p0 }
  0x4f   : > { %1937 = shalt.err (!%p1934_p12)
}
  0x50   : > { %1702 = dma.hbm_to_vmem [thread:$0]  (!%p2513_p1), %s2507_s3, 256, %s2502_s20, %s2528_s27  }
  0x51   : > { %s2557_s30 = sshll.u32 %s2298_s21, 8  ;;  %s403_s11 = scalar_lea.vmem [#allocation10], %s2526_s19 }
  0x52   : > { %s411_s29 = sshll.u32 %s403_s11, 4  ;;  %s3031_s5 = sld [smem:[#allocation41_spill]]  ;;  %s412_s29 = int_to_ptr.vmem [resolvable:$true] %s411_s29 }
  0x53   : > { %p2570_p8 = pneg %p2521_p4 }
  0x55   : > { %s3032_s3 = scalar_select %p2570_p8, 1, 0 }
  0x58   : > { %s2564_s26 = scalar_lea.hbm %s3031_s5, %s2557_s30  ;;  %s1943_s12 = scalar_lea.hbm %s3031_s5, 512 }
  0x59   : > { %s1938_s9 = scalar_lea.hbm %s2564_s26, 256  ;;  %p1944_p1 = scmp.lt.u32.totalorder %s2564_s26, %s3031_s5 }
  0x5a   : > { %p1939_p5 = scmp.ne.s32.totalorder %s2564_s26, %s1938_s9  ;;  %p1945_p3 = scmp.lt.u32.totalorder %s1943_s12, %s1938_s9 }
  0x5b   : > { %p1947_p2 = scmp.lt.u32.totalorder %s1938_s9, %s2564_s26 }
  0x5c   : > { %p1941_p13 = pnand %p2570_p8, %p1939_p5  ;;  %p1946_p9 = por %p1945_p3, %p1944_p1 }
  0x5e   : > { %p1942_p0 = pneg %p1941_p13  ;;  %p1948_p6 = por %p1947_p2, %p1946_p9 }
  0x60   : > { %p1949_p7 = pnand %p1948_p6, %p1942_p0 }
  0x62   : > { %1952 = shalt.err (!%p1949_p7)
}
  0x63   : > { %s1953_s4 = scalar_lea.vmem %s412_s29, 256  ;;  %s2309_s0 = smov [#allocation10]  }
  0x64   : > { %p1954_p10 = scmp.ne.s32.totalorder %s412_s29, %s1953_s4  ;;  %s1958_s22 = sshll.u32 %s2309_s0, 4  ;;  %s1959_s22 = int_to_ptr.vmem [resolvable:$false] %s1958_s22 }
  0x65   : > { %s1960_s20 = scalar_lea.vmem %s1959_s22, 512  ;;  %p1961_p5 = scmp.lt.s32.totalorder %s412_s29, %s1959_s22 }
  0x66   : > { %p1956_p11 = pnand %p1954_p10, %p2570_p8  ;;  %p1962_p13 = scmp.lt.s32.totalorder %s1960_s20, %s1953_s4 }
  0x68   : > { %p1957_p12 = pneg %p1956_p11  ;;  %p1963_p4 = por %p1962_p13, %p1961_p5 }
  0x6a   : > { %p1964_p1 = pnand %p1963_p4, %p1957_p12 }
  0x6c   : > { %1967 = shalt.err (!%p1964_p1)
}
  0x6d   : > { %p3033_p3 = scmp.ne.s32.totalorder %s3030_s8, 0  ;;  %p2985_p0 = scmp.eq.s32.totalorder %s2434_s24, 0 }
  0x6e   : > { %p1509_p4 = scmp.ge.s32.totalorder %s2306_s23, 1  ;;  %p323_p9 = scmp.lt.s32.totalorder %s2306_s23, 5 }
  0x6f   : > { %1705 = dma.hbm_to_vmem [thread:$0]  (!%p3033_p3), %s2564_s26, 256, %s412_s29, %s2528_s27  }
  0x70   : > { %p3034_p2 = scmp.ne.s32.totalorder %s2282_s17, %s2278_s16  ;;  %p3036_p7 = scmp.ne.s32.totalorder %s2270_s14, %s2266_s13 }
  0x71   : > { %p2611_p11 = pnand %p1509_p4, %p323_p9  ;;  %s2310_s29 = smov [#allocation5]  }
  0x72   : > { %p2598_p6 = por %p2985_p0, %p3034_p2  ;;  %p2607_p10 = por %p3036_p7, %p2985_p0 }
  0x73   : > { %s3038_s9 = scalar_select %p2611_p11, 1, 0 }
  0x74   : > { %s3035_s0 = scalar_select %p2598_p6, 1, 0 }
  0x75   : > { %s3037_s22 = scalar_select %p2607_p10, 1, 0 }
  0x76   : > { %s335_s26 = sshll.u32 %s2310_s29, 4  ;;  %p1689_p12 = pneg %p2611_p11  ;;  %s2615_s26 = int_to_ptr.vmem [resolvable:$true] %s335_s26 }
  0x77   : > { %s3039_s6 = sld [smem:[#allocation42_spill]]  ;;  %s422_s28 = scalar_lea.vmem [#allocation11], %s2526_s19 }
  0x78   : > { %p2627_p5 = pnand %p1689_p12, %p2985_p0  ;;  %s430_s4 = sshll.u32 %s422_s28, 4  ;;  %s2632_s4 = int_to_ptr.vmem [resolvable:$true] %s430_s4 }
  0x79   : > { %s2311_s20 = smov [#allocation7]   ;;  %s3041_s1 = sld [smem:[#allocation38_spill]] }
  0x7a   : > { %s3040_s13 = scalar_select %p2627_p5, 1, 0 }
  0x7b   : > { %s2634_s29 = sshll.u32 %s2311_s20, 4  ;;  %p2644_p1 = pneg %p2627_p5  ;;  %s349_s29 = int_to_ptr.vmem [resolvable:$true] %s2634_s29 }
  0x7d   : > { %s2623_s11 = scalar_lea.hbm %s3039_s6, %s2557_s30 }
  0x7e   : > { %s3042_s15 = scalar_select %p2644_p1, 1, 0 }
  0x7f   : > { %s1968_s18 = scalar_lea.hbm %s3041_s1, 4096 }
  0x80   : > { %p1969_p13 = scmp.ne.s32.totalorder %s3041_s1, %s1968_s18  ;;  %p1975_p2 = scmp.lt.u32.totalorder %s1968_s18, %s3041_s1 }
  0x82   : > { %p1971_p4 = pnand %p2644_p1, %p1969_p13 }
  0x84   : > { %p1972_p9 = pneg %p1971_p4 }
  0x86   : > { %p1977_p7 = pnand %p1975_p2, %p1972_p9 }
  0x88   : > { %1980 = shalt.err (!%p1977_p7)
}
  0x89   : > { %s1981_s5 = scalar_lea.vmem %s2615_s26, 4096  ;;  %p1989_p6 = scmp.lt.s32.totalorder %s2615_s26, %s2615_s26 }
  0x8a   : > { %p1982_p12 = scmp.ne.s32.totalorder %s2615_s26, %s1981_s5  ;;  %p1990_p11 = scmp.lt.s32.totalorder %s1981_s5, %s1981_s5 }
  0x8c   : > { %p1984_p0 = pnand %p1982_p12, %p2644_p1  ;;  %p1991_p13 = por %p1990_p11, %p1989_p6 }
  0x8e   : > { %p1985_p10 = pneg %p1984_p0 }
  0x90   : > { %p1992_p4 = pnand %p1991_p13, %p1985_p10 }
  0x92   : > { %1995 = shalt.err (!%p1992_p4)
}
  0x93   : > { %s2312_s21 = smov 128   ;;  %s2313_s18 = smov 8  }
  0x94   : > { %1692 = dma.hbm_to_vmem [thread:$0]  (!%p2627_p5), %s3041_s1, 4096, %s2615_s26, [#allocation6], %s2312_s21, %s2312_s21, %s2313_s18  }
  0x95   : > { %s1996_s28 = scalar_lea.hbm %s2623_s11, 256  ;;  %s2001_s25 = scalar_lea.hbm %s3039_s6, 512 }
  0x96   : > { %p1997_p0 = scmp.ne.s32.totalorder %s2623_s11, %s1996_s28  ;;  %p2002_p11 = scmp.lt.u32.totalorder %s2623_s11, %s3039_s6 }
  0x97   : > { %p2003_p9 = scmp.lt.u32.totalorder %s2001_s25, %s1996_s28  ;;  %p2005_p7 = scmp.lt.u32.totalorder %s1996_s28, %s2623_s11 }
  0x98   : > { %p1999_p6 = pnand %p1997_p0, %p2570_p8 }
  0x99   : > { %p2004_p2 = por %p2003_p9, %p2002_p11 }
  0x9a   : > { %p2000_p10 = pneg %p1999_p6 }
  0x9b   : > { %p2006_p12 = por %p2005_p7, %p2004_p2 }
  0x9d   : > { %p2007_p13 = pnand %p2006_p12, %p2000_p10 }
  0x9f   : > { %2010 = shalt.err (!%p2007_p13)
}
  0xa0   : > { %s2011_s26 = scalar_lea.vmem %s2632_s4, 256  ;;  %s2314_s21 = smov [#allocation11]  }
  0xa1   : > { %p2012_p4 = scmp.ne.s32.totalorder %s2632_s4, %s2011_s26  ;;  %s2016_s18 = sshll.u32 %s2314_s21, 4  ;;  %s2017_s18 = int_to_ptr.vmem [resolvable:$false] %s2016_s18 }
  0xa2   : > { %s2018_s16 = scalar_lea.vmem %s2017_s18, 512  ;;  %p2019_p5 = scmp.lt.s32.totalorder %s2632_s4, %s2017_s18 }
  0xa3   : > { %p2014_p0 = pnand %p2012_p4, %p2570_p8  ;;  %p2020_p1 = scmp.lt.s32.totalorder %s2018_s16, %s2011_s26 }
  0xa5   : > { %p2015_p6 = pneg %p2014_p0  ;;  %p2021_p11 = por %p2020_p1, %p2019_p5 }
  0xa7   : > { %p2022_p9 = pnand %p2021_p11, %p2015_p6 }
  0xa9   : > { %2025 = shalt.err (!%p2022_p9)
}
  0xaa   : > { %1708 = dma.hbm_to_vmem [thread:$0]  (!%p3033_p3), %s2623_s11, 256, %s2632_s4, %s2528_s27  }
  0xab   : > { %s2026_s10 = scalar_lea.hbm %s2958_s2, 2048  ;;  %p3043_p5 = scmp.ne.s32.totalorder %s3042_s15, 0 }
  0xac   : > { %p2027_p10 = scmp.ne.s32.totalorder %s2958_s2, %s2026_s10  ;;  %p2033_p7 = scmp.lt.u32.totalorder %s2026_s10, %s2958_s2 }
  0xae   : > { %p2029_p1 = pnand %p2027_p10, %p3043_p5 }
  0xb0   : > { %p2030_p2 = pneg %p2029_p1 }
  0xb2   : > { %p2035_p12 = pnand %p2033_p7, %p2030_p2 }
  0xb4   : > { %2038 = shalt.err (!%p2035_p12)
}
  0xb5   : > { %s2039_s26 = scalar_lea.vmem %s349_s29, 2048  ;;  %p2047_p6 = scmp.lt.s32.totalorder %s349_s29, %s349_s29 }
  0xb6   : > { %p2040_p13 = scmp.ne.s32.totalorder %s349_s29, %s2039_s26  ;;  %p2048_p11 = scmp.lt.s32.totalorder %s2039_s26, %s2039_s26 }
  0xb8   : > { %p2042_p4 = pnand %p2040_p13, %p3043_p5  ;;  %p2049_p9 = por %p2048_p11, %p2047_p6 }
  0xba   : > { %p2043_p0 = pneg %p2042_p4 }
  0xbc   : > { %p2050_p3 = pnand %p2049_p9, %p2043_p0 }
  0xbe   : > { %2053 = shalt.err (!%p2050_p3)
}
  0xbf   : > { %s2315_s11 = smov 64   ;;  %s2316_s4 = smov 4  }
  0xc0   : > { %p3044_p10 = scmp.ne.s32.totalorder %s3040_s13, 0  ;;  %s2317_s16 = smov [#allocation8]  }
  0xc1   : > { %s361_s23 = sshll.u32 %s2317_s16, 4  ;;  %s2710_s12 = scalar_lea.hbm %s2963_s7, %s2557_s30  ;;  %s362_s23 = int_to_ptr.vmem [resolvable:$true] %s361_s23 }
  0xc2   : > { %1695 = dma.hbm_to_vmem [thread:$0]  (!%p3044_p10), %s2958_s2, 2048, %s349_s29, [#allocation6], %s2315_s11, %s2315_s11, %s2316_s4  }
  0xc3   : > { %s3045_s5 = sld [smem:[#allocation39_spill]] }
  0xc9   : > { %s2054_s26 = scalar_lea.hbm %s3045_s5, 2048 }
  0xca   : > { %p2055_p3 = scmp.ne.s32.totalorder %s3045_s5, %s2054_s26  ;;  %p2061_p7 = scmp.lt.u32.totalorder %s2054_s26, %s3045_s5 }
  0xcc   : > { %p2057_p1 = pnand %p2055_p3, %p3043_p5 }
  0xce   : > { %p2058_p2 = pneg %p2057_p1 }
  0xd0   : > { %p2063_p12 = pnand %p2061_p7, %p2058_p2 }
  0xd2   : > { %2066 = shalt.err (!%p2063_p12)
}
  0xd3   : > { %s2067_s18 = scalar_lea.vmem %s362_s23, 2048  ;;  %p2075_p6 = scmp.lt.s32.totalorder %s362_s23, %s362_s23 }
  0xd4   : > { %p2068_p13 = scmp.ne.s32.totalorder %s362_s23, %s2067_s18  ;;  %p2076_p11 = scmp.lt.s32.totalorder %s2067_s18, %s2067_s18 }
  0xd6   : > { %p2070_p4 = pnand %p2068_p13, %p3043_p5  ;;  %p2077_p9 = por %p2076_p11, %p2075_p6 }
  0xd8   : > { %p2071_p0 = pneg %p2070_p4 }
  0xda   : > { %p2078_p8 = pnand %p2077_p9, %p2071_p0 }
  0xdc   : > { %2081 = shalt.err (!%p2078_p8)
}
  0xdd   : > { %1698 = dma.hbm_to_vmem [thread:$0]  (!%p3044_p10), %s3045_s5, 2048, %s362_s23, [#allocation9], %s2315_s11, %s2315_s11, %s2316_s4  }
  0xde   : > { %s441_s15 = scalar_lea.vmem [#allocation12], %s2526_s19  ;;  %s2082_s16 = scalar_lea.hbm %s2710_s12, 256 }
  0xdf   : > { %s449_s30 = sshll.u32 %s441_s15, 4  ;;  %p2083_p5 = scmp.ne.s32.totalorder %s2710_s12, %s2082_s16  ;;  %s450_s30 = int_to_ptr.vmem [resolvable:$true] %s449_s30 }
  0xe0   : > { %p3046_p3 = scmp.ne.s32.totalorder %s3032_s3, 0  ;;  %s2087_s10 = scalar_lea.hbm %s2963_s7, 512 }
  0xe1   : > { %p2088_p2 = scmp.lt.u32.totalorder %s2710_s12, %s2963_s7  ;;  %p2089_p7 = scmp.lt.u32.totalorder %s2087_s10, %s2082_s16 }
  0xe2   : > { %p2085_p1 = pnand %p2083_p5, %p3046_p3  ;;  %p2091_p13 = scmp.lt.u32.totalorder %s2082_s16, %s2710_s12 }
  0xe3   : > { %p2090_p12 = por %p2089_p7, %p2088_p2 }
  0xe4   : > { %p2086_p8 = pneg %p2085_p1 }
  0xe5   : > { %p2092_p10 = por %p2091_p13, %p2090_p12 }
  0xe7   : > { %p2093_p4 = pnand %p2092_p10, %p2086_p8 }
  0xe9   : > { %2096 = shalt.err (!%p2093_p4)
}
  0xea   : > { %s2097_s19 = scalar_lea.vmem %s450_s30, 256  ;;  %s2318_s11 = smov [#allocation12]  }
  0xeb   : > { %p2098_p0 = scmp.ne.s32.totalorder %s450_s30, %s2097_s19  ;;  %s2102_s4 = sshll.u32 %s2318_s11, 4  ;;  %s2103_s4 = int_to_ptr.vmem [resolvable:$false] %s2102_s4 }
  0xec   : > { %s2104_s23 = scalar_lea.vmem %s2103_s4, 512  ;;  %p2105_p9 = scmp.lt.s32.totalorder %s450_s30, %s2103_s4 }
  0xed   : > { %p2100_p6 = pnand %p2098_p0, %p3046_p3  ;;  %p2106_p5 = scmp.lt.s32.totalorder %s2104_s23, %s2097_s19 }
  0xef   : > { %p2101_p11 = pneg %p2100_p6  ;;  %p2107_p1 = por %p2106_p5, %p2105_p9 }
  0xf1   : > { %p2108_p2 = pnand %p2107_p1, %p2101_p11 }
  0xf3   : > { %2111 = shalt.err (!%p2108_p2)
}
  0xf4   : > { %p3047_p7 = scmp.ne.s32.totalorder %s3030_s8, 0  ;;  %p3048_p8 = scmp.ne.s32.totalorder %s3038_s9, 0 }
  0xf5   : > { %s460_s3 = sand.u32 (!%p3048_p8), 1, %s2434_s24   ;;  %s2753_s26 = sand.u32 (!%p3048_p8), 1, %s2282_s17  }
  0xf6   : > { %1711 = dma.hbm_to_vmem [thread:$0]  (!%p3047_p7), %s2710_s12, 256, %s450_s30, %s2528_s27  }
  0xf7   : > { %458 = sbr.rel (%p3048_p8) target bundleno = 832 (0x340), region = 52  ;;  %s1528_s29 = sshll.u32 (!%p3048_p8), %s2753_s26, 4 }
  0xf8   : > { %s461_s21 = scalar_lea.sflag (!%p3048_p8), [#allocation3], %s460_s3  ;;  %s464_s18 = scalar_lea.vmem (!%p3048_p8), [#allocation2], %s1528_s29 }
  0xf9   : > { %p3049_p3 = scmp.ne.s32.totalorder (!%p3048_p8), %s3035_s0, 0 }
  0xfe   : > { %2241 = dma.done.wait (%p3049_p3), %s461_s21, 256  }
  0xff   : > { %2243 = vsyncadd (%p3049_p3), %s461_s21, 4294967040  ;;  %p3050_p12 = scmp.eq.s32.totalorder %s2434_s24, 0 }
 0x101   : > { %2245 = dma.done.wait (%p3050_p12), [#allocation6], 6144   ;;  %p3051_p13 = pmov %p3050_p12 }
 0x102   : > { %p3052_p10 = pmov %p3050_p12 }
 0x103   : > { %2247 = vsyncadd (%p3051_p13), [#allocation6], 4294961152 }
 0x104   : > { %2249 = dma.done.wait (%p3052_p10), [#allocation9], 2048   ;;  %p3053_p4 = pmov %p3052_p10 }
 0x105   : > { %s483_s8 = sand.u32 1, %s2270_s14   ;;  %p3054_p0 = scmp.ne.s32.totalorder %s3037_s22, 0 }
 0x106   : > { %2251 = vsyncadd (%p3053_p4), [#allocation9], 4294965248  ;;  %s2771_s27 = sshll.u32 %s483_s8, 4 }
 0x107   : > { %s485_s0 = scalar_lea.vmem [#allocation10], %s2771_s27 }
 0x108   : > { %2253 = dma.done.wait (%p3054_p0), %s461_s21, 768  }
 0x109   : > { %2255 = vsyncadd (%p3054_p0), %s461_s21, 4294966528  ;;  %v2778_v0 = vld [vmem:[%s464_s18] sm:$0xff]  ;;  %v2780_v1 = vld [vmem:[%s464_s18 + $0x8] sm:$0xff]  ;;  %v581_v56 = vlaneseq  ;;  %s3055_s12 = sld [smem:[#allocation40_spill]]  ;;  %s2319_s1 = smov 64  }
 0x10a   : > { %v569_v2 = vmul.f32 %v2778_v0, %v2778_v0  ;;  %v570_v3 = vmul.f32 %v2780_v1, %v2780_v1  ;;  %v1826_v4 = vld [vmem:[#allocation5 + $0x4] ss:$8 sps:$4 sm:$0xff]   ;;  %v1828_v5 = vld [vmem:[#allocation5] ss:$8 sps:$4 sm:$0xff]   ;;  %v1829_v6 = vld [vmem:[#allocation5 + $0x14] ss:$8 sps:$4 sm:$0xff]  }
 0x10b   : > { %787 = vmatprep.subr.bf16.mxu0 %v1826_v4  ;;  %v1831_v8 = vld [vmem:[#allocation5 + $0x10] ss:$8 sps:$4 sm:$0xff]   ;;  %v1832_v9 = vld [vmem:[#allocation5 + $0x24] ss:$8 sps:$4 sm:$0xff]   ;;  %v1834_v10 = vld [vmem:[#allocation5 + $0x20] ss:$8 sps:$4 sm:$0xff]  }
 0x10c   : > { %v571_v7 = vadd.f32 %v570_v3, %v569_v2  ;;  %788 = vmatpush1.bf16.msra.mxu0 %v1828_v5  ;;  %v1835_v11 = vld [vmem:[#allocation5 + $0x34] ss:$8 sps:$4 sm:$0xff]   ;;  %v1837_v12 = vld [vmem:[#allocation5 + $0x30] ss:$8 sps:$4 sm:$0xff]   ;;  %v1850_v13 = vld [vmem:[#allocation7 + $0x40] sm:$0xff]   ;;  %v582_v58 = vshrl.u32 %v581_v56, 7 }
 0x10d   : > { %789 = vmatprep.subr.bf16.mxu0 %v1829_v6  ;;  %v1838_v14 = vld [vmem:[#allocation5 + $0x44] ss:$8 sps:$4 sm:$0xff]   ;;  %1619 = vmatprep.subr.bf16.mxu1 %v1850_v13  ;;  %v1840_v17 = vld [vmem:[#allocation5 + $0x40] ss:$8 sps:$4 sm:$0xff]   ;;  %v1841_v18 = vld [vmem:[#allocation5 + $0x54] ss:$8 sps:$4 sm:$0xff]  }
 0x10e   : > { %572 = vadd.xlane.f32.xlu0 %v571_v7  ;;  %v1853_v15 = vld [vmem:[#allocation7] sm:$0xff]   ;;  %v1855_v16 = vld [vmem:[#allocation7 + $0x48] sm:$0xff]   ;;  %v1860_v20 = vld [vmem:[#allocation7 + $0x50] sm:$0xff]   ;;  %v587_v59 = vsub.s32 1, %v582_v58  ;;  %v583_v60 = vsub.s32 0, %v582_v58  ;;  %s1536_s6 = sshll.u32 %s2753_s26, 2 }
 0x10f   : > { %1620 = vmatpush3.bf16.msra.mxu1 %v1853_v15  ;;  %v1858_v19 = vld [vmem:[#allocation7 + $0x8] sm:$0xff]   ;;  %v1843_v21 = vld [vmem:[#allocation5 + $0x50] ss:$8 sps:$4 sm:$0xff]   ;;  %v1847_v26 = vld [vmem:[#allocation5 + $0x74] ss:$8 sps:$4 sm:$0xff]   ;;  %s3056_s15 = sld [smem:[#allocation26_spill]] }
 0x110   : > { %790 = vmatpush1.bf16.msra.mxu0 %v1831_v8  ;;  %1621 = vmatprep.subr.bf16.mxu1 %v1855_v16  ;;  %v1863_v22 = vld [vmem:[#allocation7 + $0x10] sm:$0xff]   ;;  %v1844_v23 = vld [vmem:[#allocation5 + $0x64] ss:$8 sps:$4 sm:$0xff]   ;;  %v1865_v24 = vld [vmem:[#allocation7 + $0x58] sm:$0xff]   ;;  %s3057_s30 = sld [smem:[#allocation27_spill]]  ;;  %s2795_s16 = scalar_lea.vmem [#allocation16], %s1536_s6 }
 0x111   : > { %791 = vmatprep.subr.bf16.mxu0 %v1832_v9  ;;  %v1846_v25 = vld [vmem:[#allocation5 + $0x60] ss:$8 sps:$4 sm:$0xff]   ;;  %v1868_v27 = vld [vmem:[#allocation7 + $0x18] sm:$0xff]   ;;  %v1851_v30 = vld [vmem:[#allocation5 + $0x84] ss:$8 sps:$4 sm:$0xff]   ;;  %s494_s25 = scalar_lea.vmem [#allocation11], %s2771_s27 }
 0x112   : > { %v1870_v28 = vld [vmem:[#allocation7 + $0x60] sm:$0xff]   ;;  %v1849_v29 = vld [vmem:[#allocation5 + $0x70] ss:$8 sps:$4 sm:$0xff]   ;;  %v1875_v32 = vld [vmem:[#allocation7 + $0x68] sm:$0xff]   ;;  %s503_s20 = scalar_lea.vmem [#allocation12], %s2771_s27  ;;  %s1535_s19 = sshll.u32 %s2753_s26, 3 }
 0x113   : > { %1622 = vmatpush3.bf16.msra.mxu1 %v1858_v19  ;;  %v1873_v31 = vld [vmem:[#allocation7 + $0x20] sm:$0xff]   ;;  %v1856_v34 = vld [vmem:[#allocation5 + $0x94] ss:$8 sps:$4 sm:$0xff]   ;;  %v1878_v35 = vld [vmem:[#allocation7 + $0x28] sm:$0xff]   ;;  %s550_s29 = scalar_lea.vmem [#allocation13], %s1535_s19  ;;  %s3058_s8 = sld [smem:[#allocation35_spill]] }
 0x114   : > { %792 = vmatpush1.bf16.msra.mxu0 %v1834_v10  ;;  %1623 = vmatprep.subr.bf16.mxu1 %v1860_v20  ;;  %v1854_v33 = vld [vmem:[#allocation5 + $0x80] ss:$8 sps:$4 sm:$0xff]   ;;  %v1880_v36 = vld [vmem:[#allocation7 + $0x70] sm:$0xff]   ;;  %v1861_v39 = vld [vmem:[#allocation5 + $0xa4] ss:$8 sps:$4 sm:$0xff]   ;;  %s1236_s21 = sshll.u32 %s550_s29, 4  ;;  %s2823_s21 = int_to_ptr.vmem [resolvable:$true] %s1236_s21 }
 0x115   : > { %793 = vmatprep.subr.bf16.mxu0 %v1835_v11  ;;  %v1859_v37 = vld [vmem:[#allocation5 + $0x90] ss:$8 sps:$4 sm:$0xff]   ;;  %v1864_v41 = vld [vmem:[#allocation5 + $0xa0] ss:$8 sps:$4 sm:$0xff]   ;;  %v1866_v42 = vld [vmem:[#allocation5 + $0xb4] ss:$8 sps:$4 sm:$0xff]  }
 0x116   : > { %v1883_v38 = vld [vmem:[#allocation7 + $0x30] sm:$0xff]   ;;  %v1885_v40 = vld [vmem:[#allocation7 + $0x78] sm:$0xff]   ;;  %v1890_v44 = vld [vmem:[#allocation8 + $0x40] sm:$0xff]   ;;  %s1606_s13 = sshll.u32 %s3056_s15, 1  ;;  %s1607_s10 = sshll.u32 %s3057_s30, 2 }
 0x117   : > { %1624 = vmatpush3.bf16.msra.mxu1 %v1863_v22  ;;  %v1888_v43 = vld [vmem:[#allocation7 + $0x38] sm:$0xff]   ;;  %v1871_v46 = vld [vmem:[#allocation5 + $0xc4] ss:$8 sps:$4 sm:$0xff]   ;;  %v1874_v47 = vld [vmem:[#allocation5 + $0xc0] ss:$8 sps:$4 sm:$0xff]   ;;  %s1609_s28 = sshll.u32 %s3057_s30, 1  ;;  %s1232_s11 = sadd.s32 %s1607_s10, %s1606_s13 }
 0x118   : > { %794 = vmatpush1.bf16.msra.mxu0 %v1837_v12  ;;  %1625 = vmatprep.subr.bf16.mxu1 %v1865_v24  ;;  %v1869_v45 = vld [vmem:[#allocation5 + $0xb0] ss:$8 sps:$4 sm:$0xff]   ;;  %v1876_v48 = vld [vmem:[#allocation5 + $0xd4] ss:$8 sps:$4 sm:$0xff]   ;;  %v1881_v50 = vld [vmem:[#allocation5 + $0xe4] ss:$8 sps:$4 sm:$0xff]   ;;  %s2810_s4 = sadd.s32 %s3056_s15, %s1609_s28 }
 0x119   : > { %795 = vmatprep.subr.bf16.mxu0 %v1838_v14  ;;  %v1879_v49 = vld [vmem:[#allocation5 + $0xd0] ss:$8 sps:$4 sm:$0xff]   ;;  %v1884_v51 = vld [vmem:[#allocation5 + $0xe0] ss:$8 sps:$4 sm:$0xff]   ;;  %v1886_v52 = vld [vmem:[#allocation5 + $0xf4] ss:$8 sps:$4 sm:$0xff]  }
 0x11a   : > { %v1889_v53 = vld [vmem:[#allocation5 + $0xf0] ss:$8 sps:$4 sm:$0xff]   ;;  %v568_v61 = vld [vmem:[%s3055_s12] sm:$0x3]  ;;  %v1892_v10 = vld [vmem:[#allocation8 + $0x48] sm:$0xff]   ;;  %s1608_s23 = sshll.u32 %s1232_s11, 6 }
 0x11b   : > { %1626 = vmatpush3.bf16.msra.mxu1 %v1868_v27  ;;  %v588_v62 = vrot.slane %v568_v61, %v587_v59  ;;  %v584_v63 = vrot.slane %v568_v61, %v583_v60  ;;  %v1891_v9 = vld [vmem:[#allocation8] sm:$0xff]   ;;  %v1893_v11 = vld [vmem:[#allocation8 + $0x8] sm:$0xff]   ;;  %v1894_v12 = vld [vmem:[#allocation8 + $0x50] sm:$0xff]   ;;  %s1610_s18 = sshll.u32 %s2810_s4, 6  ;;  %s2815_s27 = scalar_lea.vmem [#allocation14], %s1536_s6 }
 0x11c   : > { %796 = vmatpush1.bf16.msra.mxu0 %v1840_v17  ;;  %1627 = vmatprep.subr.bf16.mxu1 %v1870_v28  ;;  %v1895_v13 = vld [vmem:[#allocation8 + $0x10] sm:$0xff]   ;;  %v1898_v14 = vld [vmem:[#allocation8 + $0x60] sm:$0xff]   ;;  %v1900_v16 = vld [vmem:[#allocation8 + $0x68] sm:$0xff]   ;;  %s3059_s12 = sld [smem:[#allocation43_spill]]  ;;  %s1266_s15 = sshll.u32 %s2795_s16, 4  ;;  %s2866_s15 = int_to_ptr.vmem [resolvable:$true] %s1266_s15 }
 0x11d   : > { %797 = vmatprep.subr.bf16.mxu0 %v1841_v18  ;;  %v1899_v15 = vld [vmem:[#allocation8 + $0x20] sm:$0xff]   ;;  %v1901_v17 = vld [vmem:[#allocation8 + $0x28] sm:$0xff]   ;;  %v1902_v18 = vld [vmem:[#allocation8 + $0x70] sm:$0xff]   ;;  %s3060_s6 = sld [smem:[#allocation44_spill]]  ;;  %s1210_s10 = scalar_lea.sflag [#allocation4], %s2753_s26 }
 0x11e   : > { %v1903_v19 = vld [vmem:[#allocation8 + $0x30] sm:$0xff]   ;;  %v1904_v20 = vld [vmem:[#allocation8 + $0x78] sm:$0xff]   ;;  %s2112_s28 = scalar_lea.vmem %s2823_s21, 128  ;;  %p3061_p11 = scmp.ne.s32.totalorder %s3058_s8, 0 }
 0x11f   : > { %1628 = vmatpush3.bf16.msra.mxu1 %v1873_v31  ;;  %p2113_p6 = scmp.ne.s32.totalorder %s2823_s21, %s2112_s28 }
 0x120   : > { %798 = vmatpush1.bf16.msra.mxu0 %v1843_v21  ;;  %1629 = vmatprep.subr.bf16.mxu1 %v1875_v32  ;;  %v1905_v21 = vld [vmem:[#allocation8 + $0x38] sm:$0xff]  }
 0x121   : > { %799 = vmatprep.subr.bf16.mxu0 %v1844_v23  ;;  %p2114_p9 = pnand %p2113_p6, %p3061_p11 }
 0x123   : > { %1630 = vmatpush3.bf16.msra.mxu1 %v1878_v35  ;;  %s2831_s13 = scalar_lea.hbm %s3060_s6, %s1610_s18  ;;  %p2115_p5 = pneg %p2114_p9 }
 0x124   : > { %800 = vmatpush1.bf16.msra.mxu0 %v1846_v25  ;;  %1631 = vmatprep.subr.bf16.mxu1 %v1880_v36 }
 0x125   : > { %801 = vmatprep.subr.bf16.mxu0 %v1847_v26 }
 0x127   : > { %1632 = vmatpush3.bf16.msra.mxu1 %v1883_v38  ;;  %v1164_v38 = vld [vmem:[%s485_s0] sm:$0xff] }
 0x128   : > { %802 = vmatpush1.bf16.msra.mxu0 %v1849_v29  ;;  %1633 = vmatprep.subr.bf16.mxu1 %v1885_v40 }
 0x129   : > { %803 = vmatprep.subr.bf16.mxu0 %v1851_v30 }
 0x12b   : > { %1634 = vmatpush3.bf16.msra.mxu1 %v1888_v43 }
 0x12c   : > { %804 = vmatpush1.bf16.msra.mxu0 %v1854_v33  ;;  %1641 = vmatprep.subr.bf16.mxu1 %v1890_v44 }
 0x12d   : > { %805 = vmatprep.subr.bf16.mxu0 %v1856_v34 }
 0x130   : > { %806 = vmatpush1.bf16.msra.mxu0 %v1859_v37  ;;  %v1175_v37 = vand.u32 127, %v581_v56 }
 0x131   : > { %807 = vmatprep.subr.bf16.mxu0 %v1861_v39  ;;  %v1165_v39 = vld [vmem:[%s485_s0 + $0x8] sm:$0xff]  ;;  %s1251_s0 = sshll.u32 %s2815_s27, 4  ;;  %s2833_s0 = int_to_ptr.vmem [resolvable:$true] %s1251_s0 }
 0x132   : > { %vm1176_vm0 = vcmp.lt.s32.totalorder %v1175_v37, 64 }
 0x134   : > { %808 = vmatpush1.bf16.msra.mxu0 %v1864_v41  ;;  %v1166_v41 = vld [vmem:[%s494_s25] sm:$0xff] }
 0x135   : > { %809 = vmatprep.subr.bf16.mxu0 %v1866_v42  ;;  %v1167_v42 = vld [vmem:[%s494_s25 + $0x8] sm:$0xff] }
 0x138   : > { %810 = vmatpush1.bf16.msra.mxu0 %v1869_v45 }
 0x139   : > { %811 = vmatprep.subr.bf16.mxu0 %v1871_v46  ;;  %v1168_v46 = vld [vmem:[%s503_s20] sm:$0xff] }
 0x13c   : > { %812 = vmatpush1.bf16.msra.mxu0 %v1874_v47  ;;  %v1169_v47 = vld [vmem:[%s503_s20 + $0x8] sm:$0xff]  ;;  %s2320_s20 = smov [#allocation13]  }
 0x13d   : > { %813 = vmatprep.subr.bf16.mxu0 %v1876_v48  ;;  %s2116_s19 = sshll.u32 %s2320_s20, 4  ;;  %s2117_s19 = int_to_ptr.vmem [resolvable:$false] %s2116_s19 }
 0x13e   : > { %s2118_s11 = scalar_lea.vmem %s2117_s19, 256  ;;  %p2119_p1 = scmp.lt.s32.totalorder %s2823_s21, %s2117_s19 }
 0x13f   : > { %p2120_p2 = scmp.lt.s32.totalorder %s2118_s11, %s2112_s28 }
 0x140   : > { %814 = vmatpush1.bf16.msra.mxu0 %v1879_v49 }
 0x141   : > { %815 = vmatprep.subr.bf16.mxu0 %v1881_v50  ;;  %p2121_p7 = por %p2120_p2, %p2119_p1 }
 0x143   : > { %p2122_p8 = pnand %p2121_p7, %p2115_p5 }
 0x144   : > { %816 = vmatpush1.bf16.msra.mxu0 %v1884_v51 }
 0x145   : > { %817 = vmatprep.subr.bf16.mxu0 %v1886_v52 }
 0x148   : > { %818 = vmatpush1.bf16.msra.mxu0 %v1889_v53 }
 0x19b   : > { %v573_v54 = vpop.xlane.xlu0 %572 }
 0x19c   : > { %v575_v55 = vmul.f32 0.00390625, %v573_v54 }
 0x19e   : > { %v576_v57 = vadd.f32 1e-05, %v575_v55 }
 0x1a0   : > { %1906 = vrsqrt.f32 %v576_v57 }
 0x1aa   : > { %v1907_v2 = vpop.eup %1906 }
 0x1ab   : > { %v579_v3 = vmul.f32 %v1907_v2, %v2780_v1  ;;  %v578_v4 = vmul.f32 %v1907_v2, %v2778_v0  ;;  %v1896_v1 = vld [vmem:[#allocation8 + $0x58] sm:$0xff]  }
 0x1ac   : > { %v1897_v0 = vld [vmem:[#allocation8 + $0x18] sm:$0xff]  }
 0x1ad   : > { %v592_v5 = vmul.f32 %v588_v62, %v579_v3  ;;  %v591_v6 = vmul.f32 %v584_v63, %v578_v4 }
 0x1af   : > { %v594_v7 = vpack.c.bf16 %v592_v5, %v592_v5  ;;  %v593_v8 = vpack.c.bf16 %v591_v6, %v591_v6 }
 0x1b1   : > { %819 = vmatprep.mubr.bf16.mxu0 %v594_v7  ;;  %988 = vmatprep.mubr.bf16.mxu1 %v594_v7 }
 0x1b2   : > { %820 = vmatmul.mubr.bf16.vlgmr.msra.gmra.mrb[0].mxu0 %v593_v8  ;;  %989 = vmatmul.mubr.bf16.vlgmr.msra.gmra.mrb[0].mxu1 %v593_v8 }
 0x1b3   : > { %1642 = vmatpush3.bf16.msra.mxu1 %v1891_v9  ;;  %1156 = vmatprep.mubr.bf16.mxu1 %v594_v7 }
 0x1b4   : > { %1643 = vmatprep.subr.bf16.mxu1 %v1892_v10 }
 0x1b7   : > { %1644 = vmatpush3.bf16.msra.mxu1 %v1893_v11 }
 0x1b8   : > { %1645 = vmatprep.subr.bf16.mxu1 %v1894_v12 }
 0x1bb   : > { %1646 = vmatpush3.bf16.msra.mxu1 %v1895_v13 }
 0x1bc   : > { %1647 = vmatprep.subr.bf16.mxu1 %v1896_v1 }
 0x1bf   : > { %1648 = vmatpush3.bf16.msra.mxu1 %v1897_v0 }
 0x1c0   : > { %1649 = vmatprep.subr.bf16.mxu1 %v1898_v14 }
 0x1c3   : > { %1650 = vmatpush3.bf16.msra.mxu1 %v1899_v15 }
 0x1c4   : > { %1651 = vmatprep.subr.bf16.mxu1 %v1900_v16 }
 0x1c7   : > { %1652 = vmatpush3.bf16.msra.mxu1 %v1901_v17 }
 0x1c8   : > { %1653 = vmatprep.subr.bf16.mxu1 %v1902_v18 }
 0x1cb   : > { %1654 = vmatpush3.bf16.msra.mxu1 %v1903_v19 }
 0x1cc   : > { %1655 = vmatprep.subr.bf16.mxu1 %v1904_v20 }
 0x1cf   : > { %1656 = vmatpush3.bf16.msra.mxu1 %v1905_v21 }
 0x1d2   : > { %1157 = vmatmul.mubr.bf16.vlgmr.msra.gmra.mrb[4].mxu1 %v593_v8 }
 0x285   : > { %v821_v22 = vpop.f32.mrb[0].mxu0  ;;  %v1635_v23 = vpop.f32.mrb[0].mxu1 }
 0x286   : > { %v1636_v24 = vpop.f32.mrb[1].mxu1  ;;  %1170 = vrot.lane.b32.xlu0 %v821_v22, %s2319_s1  ;;  %v823_v25 = vpop.f32.mrb[1].mxu0  ;;  %v1179_v48 = vmul.f32 %v1164_v38, %v821_v22 }
 0x287   : > { %v1637_v26 = vadd.f32 %v1636_v24, %v1635_v23  ;;  %v1638_v27 = vpop.f32.mrb[2].mxu1  ;;  %1172 = vrot.lane.b32.xlu1 %v823_v25, %s2319_s1  ;;  %v825_v28 = vpop.f32.mrb[2].mxu0  ;;  %v1180_v49 = vmul.f32 %v1165_v39, %v823_v25 }
 0x288   : > { %v826_v29 = vpop.f32.mrb[3].mxu0  ;;  %v1639_v30 = vpop.f32.mrb[3].mxu1 }
 0x289   : > { %v1200_v57 = vmul.f32 %v1637_v26, %v1164_v38 }
 0x28b   : > { %1198 = vrot.lane.b32.xlu1 %v1637_v26, %s2319_s1  ;;  %s2821_s1 = scalar_lea.hbm %s3059_s12, %s1608_s23 }
 0x2a5   : > { %v1657_v31 = vpop.f32.mrb[4].mxu1 }
 0x2a6   : > { %v1658_v32 = vpop.f32.mrb[5].mxu1 }
 0x2a7   : > { %v1659_v33 = vadd.f32 %v1658_v32, %v1657_v31  ;;  %v1660_v34 = vpop.f32.mrb[6].mxu1 }
 0x2a8   : > { %v1661_v35 = vpop.f32.mrb[7].mxu1 }
 0x2a9   : > { %v1207_v36 = vpack.c.bf16 %v1659_v33, %v1659_v33 }
 0x2ab   : > { %1208 = vst [vmem:[%s2795_s16] sm:$0xf] %v1207_v36 }
 0x2f8   : > { %v1171_v40 = vpop.permute.xlu0 %1170 }
 0x2f9   : > { %v1173_v43 = vpop.permute.xlu1 %1172 }
 0x2fa   : > { %v1177_v44 = vsel %vm1176_vm0, %v1171_v40, %v1173_v43  ;;  %v1178_v45 = vsel %vm1176_vm0, %v1173_v43, %v1171_v40 }
 0x2fb   : > { %v1181_v50 = vmul.f32 %v1177_v44, %v1166_v41  ;;  %v1182_v51 = vmul.f32 %v1178_v45, %v1167_v42  ;;  %v1185_v53 = vmul.f32 %v1178_v45, %v1168_v46  ;;  %v1186_v54 = vmul.f32 %v1177_v44, %v1169_v47 }
 0x2fd   : > { %v1183_v52 = vadd.f32 %v1181_v50, %v1179_v48  ;;  %v1199_v55 = vpop.permute.xlu1 %1198  ;;  %v1184_v56 = vadd.f32 %v1182_v51, %v1180_v49 }
 0x2fe   : > { %v1201_v58 = vmul.f32 %v1199_v55, %v1166_v41  ;;  %v1203_v62 = vmul.f32 %v1199_v55, %v1168_v46 }
 0x2ff   : > { %v1187_v59 = vadd.f32 %v1185_v53, %v1183_v52  ;;  %v1188_v60 = vadd.f32 %v1186_v54, %v1184_v56 }
 0x300   : > { %v1202_v61 = vadd.f32 %v1201_v58, %v1200_v57 }
 0x301   : > { %v1618_v63 = vpack.c.bf16 %v1188_v60, %v1187_v59 }
 0x302   : > { %v1204_v2 = vadd.f32 %v1203_v62, %v1202_v61 }
 0x303   : > { %1197 = vst [vmem:[%s550_s29] sm:$0xff] %v1618_v63 }
 0x304   : > { %v1205_v3 = vpack.c.bf16 %v1204_v2, %v1204_v2 }
 0x305   : > { %2125 = shalt.err (!%p2122_p8)
}
 0x306   : > { %s2126_s26 = scalar_lea.hbm %s2821_s1, 128  ;;  %s2130_s22 = scalar_lea.hbm %s3059_s12, 512 }
 0x307   : > { %p2127_p3 = scmp.ne.s32.totalorder %s2821_s1, %s2126_s26  ;;  %p2131_p10 = scmp.lt.u32.totalorder %s2821_s1, %s3059_s12 }
 0x308   : > { %p2132_p4 = scmp.lt.u32.totalorder %s2130_s22, %s2126_s26  ;;  %p2134_p6 = scmp.lt.u32.totalorder %s2126_s26, %s2821_s1 }
 0x309   : > { %p2128_p12 = pnand %p2127_p3, %p3061_p11 }
 0x30a   : > { %p2133_p0 = por %p2132_p4, %p2131_p10 }
 0x30b   : > { %p2129_p13 = pneg %p2128_p12 }
 0x30c   : > { %p2135_p9 = por %p2134_p6, %p2133_p0 }
 0x30e   : > { %p2136_p5 = pnand %p2135_p9, %p2129_p13 }
 0x310   : > { %2139 = shalt.err (!%p2136_p5)
}
 0x311   : > { %1683 = dma.vmem_to_hbm [thread:$0]  (%p3061_p11), %s2823_s21, 128, %s2821_s1, %s1210_s10   ;;  %1206 = vst [vmem:[%s2815_s27] sm:$0xf] %v1205_v3 }
 0x312   : > { %s3062_s20 = sld [smem:[#allocation45_spill]]  ;;  %s2871_s26 = scalar_lea.sflag [#allocation15], %s460_s3 }
 0x313   : > { %s2140_s23 = scalar_lea.vmem %s2833_s0, 64  ;;  %s2321_s29 = smov [#allocation14]  }
 0x314   : > { %p2141_p1 = scmp.ne.s32.totalorder %s2833_s0, %s2140_s23  ;;  %s2144_s21 = sshll.u32 %s2321_s29, 4  ;;  %s2145_s21 = int_to_ptr.vmem [resolvable:$false] %s2144_s21 }
 0x315   : > { %s2146_s4 = scalar_lea.vmem %s2145_s21, 128  ;;  %p2147_p8 = scmp.lt.s32.totalorder %s2833_s0, %s2145_s21 }
 0x316   : > { %p2142_p2 = pnand %p2141_p1, %p3061_p11  ;;  %p2148_p3 = scmp.lt.s32.totalorder %s2146_s4, %s2140_s23 }
 0x318   : > { %s3063_s11 = smov %s3062_s20  ;;  %s2862_s19 = scalar_lea.hbm %s3062_s20, %s1610_s18 }
 0x319   : > { %p2143_p7 = pneg %p2142_p2  ;;  %p2149_p12 = por %p2148_p3, %p2147_p8 }
 0x31b   : > { %p2150_p13 = pnand %p2149_p12, %p2143_p7 }
 0x31d   : > { %2153 = shalt.err (!%p2150_p13)
}
 0x31e   : > { %s2154_s24 = scalar_lea.hbm %s2831_s13, 64  ;;  %s2158_s18 = scalar_lea.hbm %s3060_s6, 256 }
 0x31f   : > { %p2155_p10 = scmp.ne.s32.totalorder %s2831_s13, %s2154_s24  ;;  %p2159_p6 = scmp.lt.u32.totalorder %s2831_s13, %s3060_s6 }
 0x320   : > { %p2160_p9 = scmp.lt.u32.totalorder %s2158_s18, %s2154_s24  ;;  %p2162_p1 = scmp.lt.u32.totalorder %s2154_s24, %s2831_s13 }
 0x321   : > { %p2156_p4 = pnand %p2155_p10, %p3061_p11 }
 0x322   : > { %p2161_p5 = por %p2160_p9, %p2159_p6 }
 0x323   : > { %p2157_p0 = pneg %p2156_p4 }
 0x324   : > { %p2163_p2 = por %p2162_p1, %p2161_p5 }
 0x326   : > { %p2164_p7 = pnand %p2163_p2, %p2157_p0 }
 0x328   : > { %2167 = shalt.err (!%p2164_p7)
}
 0x329   : > { %1684 = dma.vmem_to_hbm [thread:$0]  (%p3061_p11), %s2833_s0, 64, %s2831_s13, %s2871_s26  }
 0x32a   : > { %s2168_s10 = scalar_lea.vmem %s2866_s15, 64  ;;  %s2322_s22 = smov [#allocation16]  }
 0x32b   : > { %p2169_p8 = scmp.ne.s32.totalorder %s2866_s15, %s2168_s10  ;;  %s2172_s9 = sshll.u32 %s2322_s22, 4  ;;  %s2173_s9 = int_to_ptr.vmem [resolvable:$false] %s2172_s9 }
 0x32c   : > { %s2174_s30 = scalar_lea.vmem %s2173_s9, 128  ;;  %p2175_p13 = scmp.lt.s32.totalorder %s2866_s15, %s2173_s9 }
 0x32d   : > { %p2170_p3 = pnand %p2169_p8, %p3061_p11  ;;  %p2176_p10 = scmp.lt.s32.totalorder %s2174_s30, %s2168_s10 }
 0x32f   : > { %p2171_p12 = pneg %p2170_p3  ;;  %p2177_p4 = por %p2176_p10, %p2175_p13 }
 0x331   : > { %p2178_p0 = pnand %p2177_p4, %p2171_p12 }
 0x333   : > { %2181 = shalt.err (!%p2178_p0)
}
 0x334   : > { %s2182_s0 = scalar_lea.hbm %s2862_s19, 64  ;;  %s2186_s28 = scalar_lea.hbm %s3063_s11, 256 }
 0x335   : > { %p2183_p6 = scmp.ne.s32.totalorder %s2862_s19, %s2182_s0  ;;  %p2187_p1 = scmp.lt.u32.totalorder %s2862_s19, %s3063_s11 }
 0x336   : > { %p2188_p2 = scmp.lt.u32.totalorder %s2186_s28, %s2182_s0  ;;  %p2190_p8 = scmp.lt.u32.totalorder %s2182_s0, %s2862_s19 }
 0x337   : > { %p2184_p9 = pnand %p2183_p6, %p3061_p11 }
 0x338   : > { %p2189_p7 = por %p2188_p2, %p2187_p1 }
 0x339   : > { %p2185_p5 = pneg %p2184_p9 }
 0x33a   : > { %p2191_p3 = por %p2190_p8, %p2189_p7 }
 0x33c   : > { %p2192_p12 = pnand %p2191_p3, %p2185_p5 }
 0x33e   : > { %2195 = shalt.err (!%p2192_p12)
}
 0x33f   : > { %1685 = dma.vmem_to_hbm [thread:$0]  (%p3061_p11), %s2866_s15, 64, %s2862_s19, %s2871_s26  }
 0x340 PF: > { %s3064_s29 = sld [smem:[#allocation30_spill]]  ;;  %s3065_s21 = sld [smem:[#allocation24_spill]] }
 0x341   : > { %s3066_s4 = sld [smem:[#allocation36_spill]] }
 0x346   : > { %p1729_p13 = scmp.ge.s32.totalorder %s3064_s29, 2  ;;  %s1278_s24 = sand.u32 1, %s3065_s21  }
 0x347   : > { %p3067_p10 = scmp.ne.s32.totalorder %s3066_s4, 0  ;;  %s1279_s3 = scalar_lea.sflag [#allocation4], %s1278_s24 }
 0x349   : > { %p1713_p4 = pnand %p1729_p13, %p3067_p10 }
 0x34b   : > { %2257 = dma.done.wait (!%p1713_p4), %s1279_s3, 128  }
 0x34c   : > { %2259 = vsyncadd (!%p1713_p4), %s1279_s3, 4294967168  ;;  %s3068_s16 = sadd.s32 4294967294, %s3064_s29  }
 0x34d   : > { %s1287_s18 = sand.u32 1, %s3068_s16  }
 0x34e   : > { %s1288_s27 = scalar_lea.sflag [#allocation15], %s1287_s18 }
 0x34f   : > { %2261 = dma.done.wait (!%p1713_p4), %s1288_s27, 128  }
 0x350   : > { %2263 = vsyncadd (!%p1713_p4), %s1288_s27, 4294967168  ;;  %s32_s23 = sadd.s32 1, %s3064_s29   ;;  %s3069_s8 = sld [smem:[#allocation23_spill]] }
 0x351   : > { %p29_p11 = scmp.ge.s32.totalorder %s32_s23, 6   ;;  %s3070_s15 = sld [smem:[#allocation33_spill]] }
 0x352   : > { %s3071_s19 = sld [smem:[#allocation25_spill]]  ;;  %s3072_s18 = sld [smem:[#allocation34_spill]] }
 0x353   : > { %s3073_s26 = sld [smem:[#allocation28_spill]]  ;;  %s3074_s20 = sld [smem:[#allocation29_spill]] }
 0x354   : > { %s3075_s21 = sld [smem:[#allocation31_spill]]  ;;  %s3076_s22 = sld [smem:[#allocation32_spill]] }
 0x355   : > { %s3077_s13 = smov %s2270_s14  ;;  %s3079_s16 = smov %s2282_s17 }
 0x356   : > { %s3078_s14 = smov %s3069_s8  ;;  %31 = sbr.rel (!%p29_p11) target bundleno = 23 (0x17), region = 174 }
 0x358   : > { %s3080_s17 = smov %s3071_s19 }
 0x359   : > { %s3081_s19 = smov %s3073_s26 }
 0x35d   :  { %1302 = vsyncpa [#allocation3], 1 }
 0x35e   :  { %1304 = vsyncpa [#allocation3 + $0x1], 1 }
 0x35f   :  { %1305 = vsyncpa [#allocation6], 1 }
 0x360   :  { %1306 = vsyncpa [#allocation9], 1 }
 0x361   :  { %1307 = vsyncpa [#allocation4], 1 }
 0x362   :  { %1309 = vsyncpa [#allocation4 + $0x1], 1 }
 0x363   :  { %1310 = vsyncpa [#allocation15], 1 }
 0x364   :  { %1312 = vsyncpa [#allocation15 + $0x1], 1 }

// kernel: tpu_custom_call.1
= control target key start
LH: loop header
LB: loop body
LE: loop exit
PB: predicated region body
PF: predicated region fallthrough
CT: control target
= control target key end

     0   :  { %s2956_s0 = inlined_call_operand.hbm [shape: f32[2,16,256], index: 0, kind: input, shape index: {}]   ;;  %s2957_s1 = inlined_call_operand.hbm [shape: bf16[256,256], index: 1, kind: input, shape index: {}]   ;;  %s2958_s2 = inlined_call_operand.hbm [shape: bf16[256,128], index: 2, kind: input, shape index: {}]   ;;  %s2959_s3 = inlined_call_operand.hbm [shape: bf16[256,128], index: 3, kind: input, shape index: {}]   ;;  %s2960_s4 = inlined_call_operand.vmem [shape: f32[1,256], index: 4, kind: input, shape index: {}]   ;;  %s2961_s5 = inlined_call_operand.hbm [shape: f32[16,256], index: 5, kind: input, shape index: {}]   ;;  %s2962_s6 = inlined_call_operand.hbm [shape: f32[16,256], index: 6, kind: input, shape index: {}]   ;;  %s2963_s7 = inlined_call_operand.hbm [shape: f32[16,256], index: 7, kind: input, shape index: {}]   ;;  %s2964_s8 = inlined_call_operand.hbm [shape: bf16[2,16,256], index: 8, kind: output, shape index: {0}]   ;;  %s2965_s9 = inlined_call_operand.hbm [shape: bf16[2,16,128], index: 9, kind: output, shape index: {1}]   ;;  %s2966_s10 = inlined_call_operand.hbm [shape: bf16[2,16,128], index: 10, kind: output, shape index: {2}]  }
   0x1   :  { %3000 = sst [smem:[#allocation37_spill]] %s2956_s0 }
   0x2   :  { %3001 = sst [smem:[#allocation38_spill]] %s2957_s1 }
   0x3   :  { %3002 = sst [smem:[#allocation39_spill]] %s2959_s3 }
   0x4   :  { %3003 = sst [smem:[#allocation40_spill]] %s2960_s4 }
   0x5   :  { %3004 = sst [smem:[#allocation41_spill]] %s2961_s5 }
   0x6   :  { %3005 = sst [smem:[#allocation42_spill]] %s2962_s6 }
   0x7   :  { %3006 = sst [smem:[#allocation43_spill]] %s2964_s8 }
   0x8   :  { %3007 = sst [smem:[#allocation44_spill]] %s2965_s9 }
   0x9   :  { %3008 = sst [smem:[#allocation45_spill]] %s2966_s10 }
   0xa   :  { %16 = vsyncpa [#allocation3], 0 }
   0xb   :  { %18 = vsyncpa [#allocation3 + $0x1], 0 }
   0xc   :  { %19 = vsyncpa [#allocation6], 0 }
   0xd   :  { %20 = vsyncpa [#allocation9], 0 }
   0xe   :  { %21 = vsyncpa [#allocation4], 0 }
   0xf   :  { %23 = vsyncpa [#allocation4 + $0x1], 0 }
  0x10   :  { %24 = vsyncpa [#allocation15], 0 }
  0x11   :  { %26 = vsyncpa [#allocation15 + $0x1], 0  ;;  %s2378_s13 = smov 0   ;;  %s2380_s14 = smov 0  }
  0x12   :  { %s2382_s15 = smov 0   ;;  %s2384_s16 = smov 0  }
  0x13   :  { %s2386_s17 = smov 0   ;;  %s2388_s18 = smov 0  }
  0x14   :  { %s2390_s19 = smov 0   ;;  %s2392_s20 = smov 0  }
  0x15   :  { %s2394_s21 = smov 0   ;;  %s2396_s22 = smov 0  }
  0x16   :  { %s2398_s23 = smov 0  }
  0x17 LB: > { %3009 = sst [smem:[#allocation23_spill]] %s2274_s15  ;;  %s2434_s24 = sadd.s32 4294967295, %s2306_s23   ;;  %s2306_s23 = sphi %s2398_s23, %s32_s23   ;;  %s2302_s22 = sphi %s2396_s22, %s3076_s22   ;;  %s2298_s21 = sphi %s2394_s21, %s3075_s21   ;;  %s2294_s20 = sphi %s2392_s20, %s3074_s20   ;;  %s2290_s19 = sphi %s2390_s19, %s3081_s19   ;;  %s2286_s18 = sphi %s2388_s18, %s3072_s18   ;;  %s2282_s17 = sphi %s2386_s17, %s3080_s17   ;;  %s2278_s16 = sphi %s2384_s16, %s3079_s16   ;;  %s2274_s15 = sphi %s2382_s15, %s3070_s15   ;;  %s2270_s14 = sphi %s2380_s14, %s3078_s14   ;;  %s2266_s13 = sphi %s2378_s13, %s3077_s13  }
  0x18   : > { %3010 = sst [smem:[#allocation24_spill]] %s2278_s16  ;;  %s41_s26 = sadd.s32 1, %s2298_s21 }
  0x19   : > { %3011 = sst [smem:[#allocation25_spill]] %s2286_s18  ;;  %s44_s27 = sadd.s32 1, %s2302_s22 }
  0x1a   : > { %3012 = sst [smem:[#allocation26_spill]] %s2290_s19  ;;  %p42_p0 = scmp.ge.s32.totalorder %s41_s26, 2 }
  0x1b   : > { %3013 = sst [smem:[#allocation27_spill]] %s2294_s20  ;;  %s53_s28 = sadd.s32 1, %s2286_s18 }
  0x1c   : > { %3014 = sst [smem:[#allocation28_spill]] %s2298_s21  ;;  %p60_p1 = scmp.ne.s32.totalorder %s2286_s18, %s2282_s17 }
  0x1d   : > { %3015 = sst [smem:[#allocation29_spill]] %s2302_s22  ;;  %p61_p2 = scmp.eq.s32.totalorder %s2306_s23, 0 }
  0x1e   : > { %3016 = sst [smem:[#allocation30_spill]] %s2306_s23  ;;  %s3083_s26 = smov (%p42_p0, %s41_s26), 0 }
  0x1f   : > { %3017 = sst [smem:[#allocation31_spill]] %s3083_s26  ;;  %s3085_s27 = smov (!%p42_p0, %s44_s27), %s2302_s22 }
  0x20   : > { %s49_s29 = ssub.s32 %s2298_s21, %s3083_s26  ;;  %p2453_p3 = por %p61_p2, %p60_p1 }
  0x21   : > { %p46_p4 = scmp.ge.s32.totalorder %s3085_s27, 2  ;;  %p2977_p5 = scmp.ne.s32.totalorder %s2282_s17, %s2278_s16 }
  0x22   : > { %p161_p6 = scmp.eq.s32.totalorder %s49_s29, 0  ;;  %s163_s11 = sadd.s32 1, %s2274_s15 }
  0x23   : > { %s3087_s27 = smov (%p46_p4, %s3085_s27), 0  ;;  %p170_p7 = scmp.ne.s32.totalorder %s2274_s15, %s2270_s14 }
  0x24   : > { %3019 = sst [smem:[#allocation32_spill]] %s3087_s27  ;;  %s48_s25 = ssub.s32 %s2302_s22, %s3087_s27 }
  0x25   : > { %s2463_s12 = scalar_select %p161_p6, %s2274_s15, %s163_s11  }
  0x26   : > { %s50_s26 = sor.u32 %s49_s29, %s48_s25  ;;  %p2473_p10 = por %p170_p7, %p61_p2 }
  0x27   : > { %3020 = sst [smem:[#allocation33_spill]] %s2463_s12  ;;  %p51_p9 = scmp.eq.s32.totalorder %s50_s26, 0 }
  0x28   : > { %p254_p11 = scmp.eq.s32.totalorder %s2434_s24, 3  ;;  %s3022_s9 = sadd.s32 4294967294, %s2306_s23  }
  0x29   : > { %p260_p12 = scmp.eq.s32.totalorder %s3022_s9, 3  ;;  %p1725_p2 = scmp.lt.s32.totalorder %s2306_s23, 4 }
  0x2a   : > { %s2481_s8 = scalar_select %p51_p9, %s2286_s18, %s53_s28  }
  0x2b   : > { %p2486_p13 = por %p254_p11, %p60_p1  ;;  %p2493_p0 = por %p260_p12, %p2977_p5 }
  0x2c   : > { %3023 = sst [smem:[#allocation34_spill]] %s2481_s8  ;;  %s378_s26 = sand.u32 1, %s2306_s23  }
  0x2d   : > { %s3024_s11 = scalar_select %p2486_p13, 1, 0 }
  0x2e   : > { %s3026_s25 = scalar_select %p2493_p0, 1, 0 }
  0x2f   : > { %3025 = sst [smem:[#allocation35_spill]] %s3024_s11  ;;  %s380_s9 = sand.u32 1, %s2286_s18  }
  0x30   : > { %3027 = sst [smem:[#allocation36_spill]] %s3026_s25  ;;  %s1514_s29 = sshll.u32 %s380_s9, 4 }
  0x31   : > { %s1515_s27 = sshll.u32 %s2298_s21, 1  ;;  %s1516_s28 = sshll.u32 %s2302_s22, 2 }
  0x32   : > { %s388_s8 = sadd.s32 %s1516_s28, %s1515_s27  ;;  %s382_s12 = scalar_lea.vmem [#allocation2], %s1514_s29 }
  0x33   : > { %s392_s20 = sshll.u32 %s382_s12, 4  ;;  %s1517_s19 = sshll.u32 %s388_s8, 7  ;;  %s2502_s20 = int_to_ptr.vmem [resolvable:$true] %s392_s20 }
  0x34   : > { %s3028_s0 = sld [smem:[#allocation37_spill]]  ;;  %p2513_p1 = pnand %p1725_p2, %p2453_p3 }
  0x35   : > { %p2521_p4 = pnand %p1725_p2, %p2473_p10  ;;  %s401_s4 = sand.u32 1, %s2274_s15  }
  0x36   : > { %s2528_s27 = scalar_lea.sflag [#allocation3], %s378_s26  ;;  %p1910_p3 = pneg %p2513_p1 }
  0x37   : > { %s3030_s8 = scalar_select %p2521_p4, 1, 0 }
  0x3a   : > { %s2507_s3 = scalar_lea.hbm %s3028_s0, %s1517_s19  ;;  %s2526_s19 = sshll.u32 %s401_s4, 4 }
  0x3b   : > { %s1908_s30 = scalar_lea.hbm %s2507_s3, 256  ;;  %s1913_s11 = scalar_lea.hbm %s3028_s0, 1024 }
  0x3c   : > { %p1909_p6 = scmp.ne.s32.totalorder %s2507_s3, %s1908_s30  ;;  %p1914_p10 = scmp.lt.u32.totalorder %s2507_s3, %s3028_s0 }
  0x3d   : > { %p1915_p11 = scmp.lt.u32.totalorder %s1913_s11, %s1908_s30  ;;  %p1917_p2 = scmp.lt.u32.totalorder %s1908_s30, %s2507_s3 }
  0x3e   : > { %p1911_p7 = pnand %p1910_p3, %p1909_p6 }
  0x3f   : > { %p1916_p12 = por %p1915_p11, %p1914_p10 }
  0x40   : > { %p1912_p9 = pneg %p1911_p7 }
  0x41   : > { %p1918_p8 = por %p1917_p2, %p1916_p12 }
  0x43   : > { %p1919_p5 = pnand %p1918_p8, %p1912_p9 }
  0x45   : > { %1922 = shalt.err (!%p1919_p5)
}
  0x46   : > { %s1923_s26 = scalar_lea.vmem %s2502_s20, 256  ;;  %s2308_s4 = smov [#allocation2]  }
  0x47   : > { %p1924_p6 = scmp.ne.s32.totalorder %s2502_s20, %s1923_s26  ;;  %s1928_s10 = sshll.u32 %s2308_s4, 4  ;;  %s1929_s10 = int_to_ptr.vmem [resolvable:$false] %s1928_s10 }
  0x48   : > { %s1930_s12 = scalar_lea.vmem %s1929_s10, 512  ;;  %p1931_p13 = scmp.lt.s32.totalorder %s2502_s20, %s1929_s10 }
  0x49   : > { %p1926_p7 = pnand %p1924_p6, %p1910_p3  ;;  %p1932_p10 = scmp.lt.s32.totalorder %s1930_s12, %s1923_s26 }
  0x4b   : > { %p1927_p0 = pneg %p1926_p7  ;;  %p1933_p11 = por %p1932_p10, %p1931_p13 }
  0x4d   : > { %p1934_p12 = pnand %p1933_p11, %p1927_p0 }
  0x4f   : > { %1937 = shalt.err (!%p1934_p12)
}
  0x50   : > { %1702 = dma.hbm_to_vmem [thread:$0]  (!%p2513_p1), %s2507_s3, 256, %s2502_s20, %s2528_s27  }
  0x51   : > { %s2557_s30 = sshll.u32 %s2298_s21, 8  ;;  %s403_s11 = scalar_lea.vmem [#allocation10], %s2526_s19 }
  0x52   : > { %s411_s29 = sshll.u32 %s403_s11, 4  ;;  %s3031_s5 = sld [smem:[#allocation41_spill]]  ;;  %s412_s29 = int_to_ptr.vmem [resolvable:$true] %s411_s29 }
  0x53   : > { %p2570_p8 = pneg %p2521_p4 }
  0x55   : > { %s3032_s3 = scalar_select %p2570_p8, 1, 0 }
  0x58   : > { %s2564_s26 = scalar_lea.hbm %s3031_s5, %s2557_s30  ;;  %s1943_s12 = scalar_lea.hbm %s3031_s5, 512 }
  0x59   : > { %s1938_s9 = scalar_lea.hbm %s2564_s26, 256  ;;  %p1944_p1 = scmp.lt.u32.totalorder %s2564_s26, %s3031_s5 }
  0x5a   : > { %p1939_p5 = scmp.ne.s32.totalorder %s2564_s26, %s1938_s9  ;;  %p1945_p3 = scmp.lt.u32.totalorder %s1943_s12, %s1938_s9 }
  0x5b   : > { %p1947_p2 = scmp.lt.u32.totalorder %s1938_s9, %s2564_s26 }
  0x5c   : > { %p1941_p13 = pnand %p2570_p8, %p1939_p5  ;;  %p1946_p9 = por %p1945_p3, %p1944_p1 }
  0x5e   : > { %p1942_p0 = pneg %p1941_p13  ;;  %p1948_p6 = por %p1947_p2, %p1946_p9 }
  0x60   : > { %p1949_p7 = pnand %p1948_p6, %p1942_p0 }
  0x62   : > { %1952 = shalt.err (!%p1949_p7)
}
  0x63   : > { %s1953_s4 = scalar_lea.vmem %s412_s29, 256  ;;  %s2309_s0 = smov [#allocation10]  }
  0x64   : > { %p1954_p10 = scmp.ne.s32.totalorder %s412_s29, %s1953_s4  ;;  %s1958_s22 = sshll.u32 %s2309_s0, 4  ;;  %s1959_s22 = int_to_ptr.vmem [resolvable:$false] %s1958_s22 }
  0x65   : > { %s1960_s20 = scalar_lea.vmem %s1959_s22, 512  ;;  %p1961_p5 = scmp.lt.s32.totalorder %s412_s29, %s1959_s22 }
  0x66   : > { %p1956_p11 = pnand %p1954_p10, %p2570_p8  ;;  %p1962_p13 = scmp.lt.s32.totalorder %s1960_s20, %s1953_s4 }
  0x68   : > { %p1957_p12 = pneg %p1956_p11  ;;  %p1963_p4 = por %p1962_p13, %p1961_p5 }
  0x6a   : > { %p1964_p1 = pnand %p1963_p4, %p1957_p12 }
  0x6c   : > { %1967 = shalt.err (!%p1964_p1)
}
  0x6d   : > { %p3033_p3 = scmp.ne.s32.totalorder %s3030_s8, 0  ;;  %p2985_p0 = scmp.eq.s32.totalorder %s2434_s24, 0 }
  0x6e   : > { %p1509_p4 = scmp.ge.s32.totalorder %s2306_s23, 1  ;;  %p323_p9 = scmp.lt.s32.totalorder %s2306_s23, 5 }
  0x6f   : > { %1705 = dma.hbm_to_vmem [thread:$0]  (!%p3033_p3), %s2564_s26, 256, %s412_s29, %s2528_s27  }
  0x70   : > { %p3034_p2 = scmp.ne.s32.totalorder %s2282_s17, %s2278_s16  ;;  %p3036_p7 = scmp.ne.s32.totalorder %s2270_s14, %s2266_s13 }
  0x71   : > { %p2611_p11 = pnand %p1509_p4, %p323_p9  ;;  %s2310_s29 = smov [#allocation5]  }
  0x72   : > { %p2598_p6 = por %p2985_p0, %p3034_p2  ;;  %p2607_p10 = por %p3036_p7, %p2985_p0 }
  0x73   : > { %s3038_s9 = scalar_select %p2611_p11, 1, 0 }
  0x74   : > { %s3035_s0 = scalar_select %p2598_p6, 1, 0 }
  0x75   : > { %s3037_s22 = scalar_select %p2607_p10, 1, 0 }
  0x76   : > { %s335_s26 = sshll.u32 %s2310_s29, 4  ;;  %p1689_p12 = pneg %p2611_p11  ;;  %s2615_s26 = int_to_ptr.vmem [resolvable:$true] %s335_s26 }
  0x77   : > { %s3039_s6 = sld [smem:[#allocation42_spill]]  ;;  %s422_s28 = scalar_lea.vmem [#allocation11], %s2526_s19 }
  0x78   : > { %p2627_p5 = pnand %p1689_p12, %p2985_p0  ;;  %s430_s4 = sshll.u32 %s422_s28, 4  ;;  %s2632_s4 = int_to_ptr.vmem [resolvable:$true] %s430_s4 }
  0x79   : > { %s2311_s20 = smov [#allocation7]   ;;  %s3041_s1 = sld [smem:[#allocation38_spill]] }
  0x7a   : > { %s3040_s13 = scalar_select %p2627_p5, 1, 0 }
  0x7b   : > { %s2634_s29 = sshll.u32 %s2311_s20, 4  ;;  %p2644_p1 = pneg %p2627_p5  ;;  %s349_s29 = int_to_ptr.vmem [resolvable:$true] %s2634_s29 }
  0x7d   : > { %s2623_s11 = scalar_lea.hbm %s3039_s6, %s2557_s30 }
  0x7e   : > { %s3042_s15 = scalar_select %p2644_p1, 1, 0 }
  0x7f   : > { %s1968_s18 = scalar_lea.hbm %s3041_s1, 4096 }
  0x80   : > { %p1969_p13 = scmp.ne.s32.totalorder %s3041_s1, %s1968_s18  ;;  %p1975_p2 = scmp.lt.u32.totalorder %s1968_s18, %s3041_s1 }
  0x82   : > { %p1971_p4 = pnand %p2644_p1, %p1969_p13 }
  0x84   : > { %p1972_p9 = pneg %p1971_p4 }
  0x86   : > { %p1977_p7 = pnand %p1975_p2, %p1972_p9 }
  0x88   : > { %1980 = shalt.err (!%p1977_p7)
}
  0x89   : > { %s1981_s5 = scalar_lea.vmem %s2615_s26, 4096  ;;  %p1989_p6 = scmp.lt.s32.totalorder %s2615_s26, %s2615_s26 }
  0x8a   : > { %p1982_p12 = scmp.ne.s32.totalorder %s2615_s26, %s1981_s5  ;;  %p1990_p11 = scmp.lt.s32.totalorder %s1981_s5, %s1981_s5 }
  0x8c   : > { %p1984_p0 = pnand %p1982_p12, %p2644_p1  ;;  %p1991_p13 = por %p1990_p11, %p1989_p6 }
  0x8e   : > { %p1985_p10 = pneg %p1984_p0 }
  0x90   : > { %p1992_p4 = pnand %p1991_p13, %p1985_p10 }
  0x92   : > { %1995 = shalt.err (!%p1992_p4)
}
  0x93   : > { %s2312_s21 = smov 128   ;;  %s2313_s18 = smov 8  }
  0x94   : > { %1692 = dma.hbm_to_vmem [thread:$0]  (!%p2627_p5), %s3041_s1, 4096, %s2615_s26, [#allocation6], %s2312_s21, %s2312_s21, %s2313_s18  }
  0x95   : > { %s1996_s28 = scalar_lea.hbm %s2623_s11, 256  ;;  %s2001_s25 = scalar_lea.hbm %s3039_s6, 512 }
  0x96   : > { %p1997_p0 = scmp.ne.s32.totalorder %s2623_s11, %s1996_s28  ;;  %p2002_p11 = scmp.lt.u32.totalorder %s2623_s11, %s3039_s6 }
  0x97   : > { %p2003_p9 = scmp.lt.u32.totalorder %s2001_s25, %s1996_s28  ;;  %p2005_p7 = scmp.lt.u32.totalorder %s1996_s28, %s2623_s11 }
  0x98   : > { %p1999_p6 = pnand %p1997_p0, %p2570_p8 }
  0x99   : > { %p2004_p2 = por %p2003_p9, %p2002_p11 }
  0x9a   : > { %p2000_p10 = pneg %p1999_p6 }
  0x9b   : > { %p2006_p12 = por %p2005_p7, %p2004_p2 }
  0x9d   : > { %p2007_p13 = pnand %p2006_p12, %p2000_p10 }
  0x9f   : > { %2010 = shalt.err (!%p2007_p13)
}
  0xa0   : > { %s2011_s26 = scalar_lea.vmem %s2632_s4, 256  ;;  %s2314_s21 = smov [#allocation11]  }
  0xa1   : > { %p2012_p4 = scmp.ne.s32.totalorder %s2632_s4, %s2011_s26  ;;  %s2016_s18 = sshll.u32 %s2314_s21, 4  ;;  %s2017_s18 = int_to_ptr.vmem [resolvable:$false] %s2016_s18 }
  0xa2   : > { %s2018_s16 = scalar_lea.vmem %s2017_s18, 512  ;;  %p2019_p5 = scmp.lt.s32.totalorder %s2632_s4, %s2017_s18 }
  0xa3   : > { %p2014_p0 = pnand %p2012_p4, %p2570_p8  ;;  %p2020_p1 = scmp.lt.s32.totalorder %s2018_s16, %s2011_s26 }
  0xa5   : > { %p2015_p6 = pneg %p2014_p0  ;;  %p2021_p11 = por %p2020_p1, %p2019_p5 }
  0xa7   : > { %p2022_p9 = pnand %p2021_p11, %p2015_p6 }
  0xa9   : > { %2025 = shalt.err (!%p2022_p9)
}
  0xaa   : > { %1708 = dma.hbm_to_vmem [thread:$0]  (!%p3033_p3), %s2623_s11, 256, %s2632_s4, %s2528_s27  }
  0xab   : > { %s2026_s10 = scalar_lea.hbm %s2958_s2, 2048  ;;  %p3043_p5 = scmp.ne.s32.totalorder %s3042_s15, 0 }
  0xac   : > { %p2027_p10 = scmp.ne.s32.totalorder %s2958_s2, %s2026_s10  ;;  %p2033_p7 = scmp.lt.u32.totalorder %s2026_s10, %s2958_s2 }
  0xae   : > { %p2029_p1 = pnand %p2027_p10, %p3043_p5 }
  0xb0   : > { %p2030_p2 = pneg %p2029_p1 }
  0xb2   : > { %p2035_p12 = pnand %p2033_p7, %p2030_p2 }
  0xb4   : > { %2038 = shalt.err (!%p2035_p12)
}
  0xb5   : > { %s2039_s26 = scalar_lea.vmem %s349_s29, 2048  ;;  %p2047_p6 = scmp.lt.s32.totalorder %s349_s29, %s349_s29 }
  0xb6   : > { %p2040_p13 = scmp.ne.s32.totalorder %s349_s29, %s2039_s26  ;;  %p2048_p11 = scmp.lt.s32.totalorder %s2039_s26, %s2039_s26 }
  0xb8   : > { %p2042_p4 = pnand %p2040_p13, %p3043_p5  ;;  %p2049_p9 = por %p2048_p11, %p2047_p6 }
  0xba   : > { %p2043_p0 = pneg %p2042_p4 }
  0xbc   : > { %p2050_p3 = pnand %p2049_p9, %p2043_p0 }
  0xbe   : > { %2053 = shalt.err (!%p2050_p3)
}
  0xbf   : > { %s2315_s11 = smov 64   ;;  %s2316_s4 = smov 4  }
  0xc0   : > { %p3044_p10 = scmp.ne.s32.totalorder %s3040_s13, 0  ;;  %s2317_s16 = smov [#allocation8]  }
  0xc1   : > { %s361_s23 = sshll.u32 %s2317_s16, 4  ;;  %s2710_s12 = scalar_lea.hbm %s2963_s7, %s2557_s30  ;;  %s362_s23 = int_to_ptr.vmem [resolvable:$true] %s361_s23 }
  0xc2   : > { %1695 = dma.hbm_to_vmem [thread:$0]  (!%p3044_p10), %s2958_s2, 2048, %s349_s29, [#allocation6], %s2315_s11, %s2315_s11, %s2316_s4  }
  0xc3   : > { %s3045_s5 = sld [smem:[#allocation39_spill]] }
  0xc9   : > { %s2054_s26 = scalar_lea.hbm %s3045_s5, 2048 }
  0xca   : > { %p2055_p3 = scmp.ne.s32.totalorder %s3045_s5, %s2054_s26  ;;  %p2061_p7 = scmp.lt.u32.totalorder %s2054_s26, %s3045_s5 }
  0xcc   : > { %p2057_p1 = pnand %p2055_p3, %p3043_p5 }
  0xce   : > { %p2058_p2 = pneg %p2057_p1 }
  0xd0   : > { %p2063_p12 = pnand %p2061_p7, %p2058_p2 }
  0xd2   : > { %2066 = shalt.err (!%p2063_p12)
}
  0xd3   : > { %s2067_s18 = scalar_lea.vmem %s362_s23, 2048  ;;  %p2075_p6 = scmp.lt.s32.totalorder %s362_s23, %s362_s23 }
  0xd4   : > { %p2068_p13 = scmp.ne.s32.totalorder %s362_s23, %s2067_s18  ;;  %p2076_p11 = scmp.lt.s32.totalorder %s2067_s18, %s2067_s18 }
  0xd6   : > { %p2070_p4 = pnand %p2068_p13, %p3043_p5  ;;  %p2077_p9 = por %p2076_p11, %p2075_p6 }
  0xd8   : > { %p2071_p0 = pneg %p2070_p4 }
  0xda   : > { %p2078_p8 = pnand %p2077_p9, %p2071_p0 }
  0xdc   : > { %2081 = shalt.err (!%p2078_p8)
}
  0xdd   : > { %1698 = dma.hbm_to_vmem [thread:$0]  (!%p3044_p10), %s3045_s5, 2048, %s362_s23, [#allocation9], %s2315_s11, %s2315_s11, %s2316_s4  }
  0xde   : > { %s441_s15 = scalar_lea.vmem [#allocation12], %s2526_s19  ;;  %s2082_s16 = scalar_lea.hbm %s2710_s12, 256 }
  0xdf   : > { %s449_s30 = sshll.u32 %s441_s15, 4  ;;  %p2083_p5 = scmp.ne.s32.totalorder %s2710_s12, %s2082_s16  ;;  %s450_s30 = int_to_ptr.vmem [resolvable:$true] %s449_s30 }
  0xe0   : > { %p3046_p3 = scmp.ne.s32.totalorder %s3032_s3, 0  ;;  %s2087_s10 = scalar_lea.hbm %s2963_s7, 512 }
  0xe1   : > { %p2088_p2 = scmp.lt.u32.totalorder %s2710_s12, %s2963_s7  ;;  %p2089_p7 = scmp.lt.u32.totalorder %s2087_s10, %s2082_s16 }
  0xe2   : > { %p2085_p1 = pnand %p2083_p5, %p3046_p3  ;;  %p2091_p13 = scmp.lt.u32.totalorder %s2082_s16, %s2710_s12 }
  0xe3   : > { %p2090_p12 = por %p2089_p7, %p2088_p2 }
  0xe4   : > { %p2086_p8 = pneg %p2085_p1 }
  0xe5   : > { %p2092_p10 = por %p2091_p13, %p2090_p12 }
  0xe7   : > { %p2093_p4 = pnand %p2092_p10, %p2086_p8 }
  0xe9   : > { %2096 = shalt.err (!%p2093_p4)
}
  0xea   : > { %s2097_s19 = scalar_lea.vmem %s450_s30, 256  ;;  %s2318_s11 = smov [#allocation12]  }
  0xeb   : > { %p2098_p0 = scmp.ne.s32.totalorder %s450_s30, %s2097_s19  ;;  %s2102_s4 = sshll.u32 %s2318_s11, 4  ;;  %s2103_s4 = int_to_ptr.vmem [resolvable:$false] %s2102_s4 }
  0xec   : > { %s2104_s23 = scalar_lea.vmem %s2103_s4, 512  ;;  %p2105_p9 = scmp.lt.s32.totalorder %s450_s30, %s2103_s4 }
  0xed   : > { %p2100_p6 = pnand %p2098_p0, %p3046_p3  ;;  %p2106_p5 = scmp.lt.s32.totalorder %s2104_s23, %s2097_s19 }
  0xef   : > { %p2101_p11 = pneg %p2100_p6  ;;  %p2107_p1 = por %p2106_p5, %p2105_p9 }
  0xf1   : > { %p2108_p2 = pnand %p2107_p1, %p2101_p11 }
  0xf3   : > { %2111 = shalt.err (!%p2108_p2)
}
  0xf4   : > { %p3047_p7 = scmp.ne.s32.totalorder %s3030_s8, 0  ;;  %p3048_p8 = scmp.ne.s32.totalorder %s3038_s9, 0 }
  0xf5   : > { %s460_s3 = sand.u32 (!%p3048_p8), 1, %s2434_s24   ;;  %s2753_s26 = sand.u32 (!%p3048_p8), 1, %s2282_s17  }
  0xf6   : > { %1711 = dma.hbm_to_vmem [thread:$0]  (!%p3047_p7), %s2710_s12, 256, %s450_s30, %s2528_s27  }
  0xf7   : > { %458 = sbr.rel (%p3048_p8) target bundleno = 832 (0x340), region = 52  ;;  %s1528_s29 = sshll.u32 (!%p3048_p8), %s2753_s26, 4 }
  0xf8   : > { %s461_s21 = scalar_lea.sflag (!%p3048_p8), [#allocation3], %s460_s3  ;;  %s464_s18 = scalar_lea.vmem (!%p3048_p8), [#allocation2], %s1528_s29 }
  0xf9   : > { %p3049_p3 = scmp.ne.s32.totalorder (!%p3048_p8), %s3035_s0, 0 }
  0xfe   : > { %2241 = dma.done.wait (%p3049_p3), %s461_s21, 256  }
  0xff   : > { %2243 = vsyncadd (%p3049_p3), %s461_s21, 4294967040  ;;  %p3050_p12 = scmp.eq.s32.totalorder %s2434_s24, 0 }
 0x101   : > { %2245 = dma.done.wait (%p3050_p12), [#allocation6], 6144   ;;  %p3051_p13 = pmov %p3050_p12 }
 0x102   : > { %p3052_p10 = pmov %p3050_p12 }
 0x103   : > { %2247 = vsyncadd (%p3051_p13), [#allocation6], 4294961152 }
 0x104   : > { %2249 = dma.done.wait (%p3052_p10), [#allocation9], 2048   ;;  %p3053_p4 = pmov %p3052_p10 }
 0x105   : > { %s483_s8 = sand.u32 1, %s2270_s14   ;;  %p3054_p0 = scmp.ne.s32.totalorder %s3037_s22, 0 }
 0x106   : > { %2251 = vsyncadd (%p3053_p4), [#allocation9], 4294965248  ;;  %s2771_s27 = sshll.u32 %s483_s8, 4 }
 0x107   : > { %s485_s0 = scalar_lea.vmem [#allocation10], %s2771_s27 }
 0x108   : > { %2253 = dma.done.wait (%p3054_p0), %s461_s21, 768  }
 0x109   : > { %2255 = vsyncadd (%p3054_p0), %s461_s21, 4294966528  ;;  %v2778_v0 = vld [vmem:[%s464_s18] sm:$0xff]  ;;  %v2780_v1 = vld [vmem:[%s464_s18 + $0x8] sm:$0xff]  ;;  %v581_v56 = vlaneseq  ;;  %s3055_s12 = sld [smem:[#allocation40_spill]]  ;;  %s2319_s1 = smov 64  }
 0x10a   : > { %v569_v2 = vmul.f32 %v2778_v0, %v2778_v0  ;;  %v570_v3 = vmul.f32 %v2780_v1, %v2780_v1  ;;  %v1826_v4 = vld [vmem:[#allocation5 + $0x4] ss:$8 sps:$4 sm:$0xff]   ;;  %v1828_v5 = vld [vmem:[#allocation5] ss:$8 sps:$4 sm:$0xff]   ;;  %v1829_v6 = vld [vmem:[#allocation5 + $0x14] ss:$8 sps:$4 sm:$0xff]  }
 0x10b   : > { %787 = vmatprep.subr.bf16.mxu0 %v1826_v4  ;;  %v1831_v8 = vld [vmem:[#allocation5 + $0x10] ss:$8 sps:$4 sm:$0xff]   ;;  %v1832_v9 = vld [vmem:[#allocation5 + $0x24] ss:$8 sps:$4 sm:$0xff]   ;;  %v1834_v10 = vld [vmem:[#allocation5 + $0x20] ss:$8 sps:$4 sm:$0xff]  }
 0x10c   : > { %v571_v7 = vadd.f32 %v570_v3, %v569_v2  ;;  %788 = vmatpush1.bf16.msra.mxu0 %v1828_v5  ;;  %v1835_v11 = vld [vmem:[#allocation5 + $0x34] ss:$8 sps:$4 sm:$0xff]   ;;  %v1837_v12 = vld [vmem:[#allocation5 + $0x30] ss:$8 sps:$4 sm:$0xff]   ;;  %v1850_v13 = vld [vmem:[#allocation7 + $0x40] sm:$0xff]   ;;  %v582_v58 = vshrl.u32 %v581_v56, 7 }
 0x10d   : > { %789 = vmatprep.subr.bf16.mxu0 %v1829_v6  ;;  %v1838_v14 = vld [vmem:[#allocation5 + $0x44] ss:$8 sps:$4 sm:$0xff]   ;;  %1619 = vmatprep.subr.bf16.mxu1 %v1850_v13  ;;  %v1840_v17 = vld [vmem:[#allocation5 + $0x40] ss:$8 sps:$4 sm:$0xff]   ;;  %v1841_v18 = vld [vmem:[#allocation5 + $0x54] ss:$8 sps:$4 sm:$0xff]  }
 0x10e   : > { %572 = vadd.xlane.f32.xlu0 %v571_v7  ;;  %v1853_v15 = vld [vmem:[#allocation7] sm:$0xff]   ;;  %v1855_v16 = vld [vmem:[#allocation7 + $0x48] sm:$0xff]   ;;  %v1860_v20 = vld [vmem:[#allocation7 + $0x50] sm:$0xff]   ;;  %v587_v59 = vsub.s32 1, %v582_v58  ;;  %v583_v60 = vsub.s32 0, %v582_v58  ;;  %s1536_s6 = sshll.u32 %s2753_s26, 2 }
 0x10f   : > { %1620 = vmatpush3.bf16.msra.mxu1 %v1853_v15  ;;  %v1858_v19 = vld [vmem:[#allocation7 + $0x8] sm:$0xff]   ;;  %v1843_v21 = vld [vmem:[#allocation5 + $0x50] ss:$8 sps:$4 sm:$0xff]   ;;  %v1847_v26 = vld [vmem:[#allocation5 + $0x74] ss:$8 sps:$4 sm:$0xff]   ;;  %s3056_s15 = sld [smem:[#allocation26_spill]] }
 0x110   : > { %790 = vmatpush1.bf16.msra.mxu0 %v1831_v8  ;;  %1621 = vmatprep.subr.bf16.mxu1 %v1855_v16  ;;  %v1863_v22 = vld [vmem:[#allocation7 + $0x10] sm:$0xff]   ;;  %v1844_v23 = vld [vmem:[#allocation5 + $0x64] ss:$8 sps:$4 sm:$0xff]   ;;  %v1865_v24 = vld [vmem:[#allocation7 + $0x58] sm:$0xff]   ;;  %s3057_s30 = sld [smem:[#allocation27_spill]]  ;;  %s2795_s16 = scalar_lea.vmem [#allocation16], %s1536_s6 }
 0x111   : > { %791 = vmatprep.subr.bf16.mxu0 %v1832_v9  ;;  %v1846_v25 = vld [vmem:[#allocation5 + $0x60] ss:$8 sps:$4 sm:$0xff]   ;;  %v1868_v27 = vld [vmem:[#allocation7 + $0x18] sm:$0xff]   ;;  %v1851_v30 = vld [vmem:[#allocation5 + $0x84] ss:$8 sps:$4 sm:$0xff]   ;;  %s494_s25 = scalar_lea.vmem [#allocation11], %s2771_s27 }
 0x112   : > { %v1870_v28 = vld [vmem:[#allocation7 + $0x60] sm:$0xff]   ;;  %v1849_v29 = vld [vmem:[#allocation5 + $0x70] ss:$8 sps:$4 sm:$0xff]   ;;  %v1875_v32 = vld [vmem:[#allocation7 + $0x68] sm:$0xff]   ;;  %s503_s20 = scalar_lea.vmem [#allocation12], %s2771_s27  ;;  %s1535_s19 = sshll.u32 %s2753_s26, 3 }
 0x113   : > { %1622 = vmatpush3.bf16.msra.mxu1 %v1858_v19  ;;  %v1873_v31 = vld [vmem:[#allocation7 + $0x20] sm:$0xff]   ;;  %v1856_v34 = vld [vmem:[#allocation5 + $0x94] ss:$8 sps:$4 sm:$0xff]   ;;  %v1878_v35 = vld [vmem:[#allocation7 + $0x28] sm:$0xff]   ;;  %s550_s29 = scalar_lea.vmem [#allocation13], %s1535_s19  ;;  %s3058_s8 = sld [smem:[#allocation35_spill]] }
 0x114   : > { %792 = vmatpush1.bf16.msra.mxu0 %v1834_v10  ;;  %1623 = vmatprep.subr.bf16.mxu1 %v1860_v20  ;;  %v1854_v33 = vld [vmem:[#allocation5 + $0x80] ss:$8 sps:$4 sm:$0xff]   ;;  %v1880_v36 = vld [vmem:[#allocation7 + $0x70] sm:$0xff]   ;;  %v1861_v39 = vld [vmem:[#allocation5 + $0xa4] ss:$8 sps:$4 sm:$0xff]   ;;  %s1236_s21 = sshll.u32 %s550_s29, 4  ;;  %s2823_s21 = int_to_ptr.vmem [resolvable:$true] %s1236_s21 }
 0x115   : > { %793 = vmatprep.subr.bf16.mxu0 %v1835_v11  ;;  %v1859_v37 = vld [vmem:[#allocation5 + $0x90] ss:$8 sps:$4 sm:$0xff]   ;;  %v1864_v41 = vld [vmem:[#allocation5 + $0xa0] ss:$8 sps:$4 sm:$0xff]   ;;  %v1866_v42 = vld [vmem:[#allocation5 + $0xb4] ss:$8 sps:$4 sm:$0xff]  }
 0x116   : > { %v1883_v38 = vld [vmem:[#allocation7 + $0x30] sm:$0xff]   ;;  %v1885_v40 = vld [vmem:[#allocation7 + $0x78] sm:$0xff]   ;;  %v1890_v44 = vld [vmem:[#allocation8 + $0x40] sm:$0xff]   ;;  %s1606_s13 = sshll.u32 %s3056_s15, 1  ;;  %s1607_s10 = sshll.u32 %s3057_s30, 2 }
 0x117   : > { %1624 = vmatpush3.bf16.msra.mxu1 %v1863_v22  ;;  %v1888_v43 = vld [vmem:[#allocation7 + $0x38] sm:$0xff]   ;;  %v1871_v46 = vld [vmem:[#allocation5 + $0xc4] ss:$8 sps:$4 sm:$0xff]   ;;  %v1874_v47 = vld [vmem:[#allocation5 + $0xc0] ss:$8 sps:$4 sm:$0xff]   ;;  %s1609_s28 = sshll.u32 %s3057_s30, 1  ;;  %s1232_s11 = sadd.s32 %s1607_s10, %s1606_s13 }
 0x118   : > { %794 = vmatpush1.bf16.msra.mxu0 %v1837_v12  ;;  %1625 = vmatprep.subr.bf16.mxu1 %v1865_v24  ;;  %v1869_v45 = vld [vmem:[#allocation5 + $0xb0] ss:$8 sps:$4 sm:$0xff]   ;;  %v1876_v48 = vld [vmem:[#allocation5 + $0xd4] ss:$8 sps:$4 sm:$0xff]   ;;  %v1881_v50 = vld [vmem:[#allocation5 + $0xe4] ss:$8 sps:$4 sm:$0xff]   ;;  %s2810_s4 = sadd.s32 %s3056_s15, %s1609_s28 }
 0x119   : > { %795 = vmatprep.subr.bf16.mxu0 %v1838_v14  ;;  %v1879_v49 = vld [vmem:[#allocation5 + $0xd0] ss:$8 sps:$4 sm:$0xff]   ;;  %v1884_v51 = vld [vmem:[#allocation5 + $0xe0] ss:$8 sps:$4 sm:$0xff]   ;;  %v1886_v52 = vld [vmem:[#allocation5 + $0xf4] ss:$8 sps:$4 sm:$0xff]  }
 0x11a   : > { %v1889_v53 = vld [vmem:[#allocation5 + $0xf0] ss:$8 sps:$4 sm:$0xff]   ;;  %v568_v61 = vld [vmem:[%s3055_s12] sm:$0x3]  ;;  %v1892_v10 = vld [vmem:[#allocation8 + $0x48] sm:$0xff]   ;;  %s1608_s23 = sshll.u32 %s1232_s11, 6 }
 0x11b   : > { %1626 = vmatpush3.bf16.msra.mxu1 %v1868_v27  ;;  %v588_v62 = vrot.slane %v568_v61, %v587_v59  ;;  %v584_v63 = vrot.slane %v568_v61, %v583_v60  ;;  %v1891_v9 = vld [vmem:[#allocation8] sm:$0xff]   ;;  %v1893_v11 = vld [vmem:[#allocation8 + $0x8] sm:$0xff]   ;;  %v1894_v12 = vld [vmem:[#allocation8 + $0x50] sm:$0xff]   ;;  %s1610_s18 = sshll.u32 %s2810_s4, 6  ;;  %s2815_s27 = scalar_lea.vmem [#allocation14], %s1536_s6 }
 0x11c   : > { %796 = vmatpush1.bf16.msra.mxu0 %v1840_v17  ;;  %1627 = vmatprep.subr.bf16.mxu1 %v1870_v28  ;;  %v1895_v13 = vld [vmem:[#allocation8 + $0x10] sm:$0xff]   ;;  %v1898_v14 = vld [vmem:[#allocation8 + $0x60] sm:$0xff]   ;;  %v1900_v16 = vld [vmem:[#allocation8 + $0x68] sm:$0xff]   ;;  %s3059_s12 = sld [smem:[#allocation43_spill]]  ;;  %s1266_s15 = sshll.u32 %s2795_s16, 4  ;;  %s2866_s15 = int_to_ptr.vmem [resolvable:$true] %s1266_s15 }
 0x11d   : > { %797 = vmatprep.subr.bf16.mxu0 %v1841_v18  ;;  %v1899_v15 = vld [vmem:[#allocation8 + $0x20] sm:$0xff]   ;;  %v1901_v17 = vld [vmem:[#allocation8 + $0x28] sm:$0xff]   ;;  %v1902_v18 = vld [vmem:[#allocation8 + $0x70] sm:$0xff]   ;;  %s3060_s6 = sld [smem:[#allocation44_spill]]  ;;  %s1210_s10 = scalar_lea.sflag [#allocation4], %s2753_s26 }
 0x11e   : > { %v1903_v19 = vld [vmem:[#allocation8 + $0x30] sm:$0xff]   ;;  %v1904_v20 = vld [vmem:[#allocation8 + $0x78] sm:$0xff]   ;;  %s2112_s28 = scalar_lea.vmem %s2823_s21, 128  ;;  %p3061_p11 = scmp.ne.s32.totalorder %s3058_s8, 0 }
 0x11f   : > { %1628 = vmatpush3.bf16.msra.mxu1 %v1873_v31  ;;  %p2113_p6 = scmp.ne.s32.totalorder %s2823_s21, %s2112_s28 }
 0x120   : > { %798 = vmatpush1.bf16.msra.mxu0 %v1843_v21  ;;  %1629 = vmatprep.subr.bf16.mxu1 %v1875_v32  ;;  %v1905_v21 = vld [vmem:[#allocation8 + $0x38] sm:$0xff]  }
 0x121   : > { %799 = vmatprep.subr.bf16.mxu0 %v1844_v23  ;;  %p2114_p9 = pnand %p2113_p6, %p3061_p11 }
 0x123   : > { %1630 = vmatpush3.bf16.msra.mxu1 %v1878_v35  ;;  %s2831_s13 = scalar_lea.hbm %s3060_s6, %s1610_s18  ;;  %p2115_p5 = pneg %p2114_p9 }
 0x124   : > { %800 = vmatpush1.bf16.msra.mxu0 %v1846_v25  ;;  %1631 = vmatprep.subr.bf16.mxu1 %v1880_v36 }
 0x125   : > { %801 = vmatprep.subr.bf16.mxu0 %v1847_v26 }
 0x127   : > { %1632 = vmatpush3.bf16.msra.mxu1 %v1883_v38  ;;  %v1164_v38 = vld [vmem:[%s485_s0] sm:$0xff] }
 0x128   : > { %802 = vmatpush1.bf16.msra.mxu0 %v1849_v29  ;;  %1633 = vmatprep.subr.bf16.mxu1 %v1885_v40 }
 0x129   : > { %803 = vmatprep.subr.bf16.mxu0 %v1851_v30 }
 0x12b   : > { %1634 = vmatpush3.bf16.msra.mxu1 %v1888_v43 }
 0x12c   : > { %804 = vmatpush1.bf16.msra.mxu0 %v1854_v33  ;;  %1641 = vmatprep.subr.bf16.mxu1 %v1890_v44 }
 0x12d   : > { %805 = vmatprep.subr.bf16.mxu0 %v1856_v34 }
 0x130   : > { %806 = vmatpush1.bf16.msra.mxu0 %v1859_v37  ;;  %v1175_v37 = vand.u32 127, %v581_v56 }
 0x131   : > { %807 = vmatprep.subr.bf16.mxu0 %v1861_v39  ;;  %v1165_v39 = vld [vmem:[%s485_s0 + $0x8] sm:$0xff]  ;;  %s1251_s0 = sshll.u32 %s2815_s27, 4  ;;  %s2833_s0 = int_to_ptr.vmem [resolvable:$true] %s1251_s0 }
 0x132   : > { %vm1176_vm0 = vcmp.lt.s32.totalorder %v1175_v37, 64 }
 0x134   : > { %808 = vmatpush1.bf16.msra.mxu0 %v1864_v41  ;;  %v1166_v41 = vld [vmem:[%s494_s25] sm:$0xff] }
 0x135   : > { %809 = vmatprep.subr.bf16.mxu0 %v1866_v42  ;;  %v1167_v42 = vld [vmem:[%s494_s25 + $0x8] sm:$0xff] }
 0x138   : > { %810 = vmatpush1.bf16.msra.mxu0 %v1869_v45 }
 0x139   : > { %811 = vmatprep.subr.bf16.mxu0 %v1871_v46  ;;  %v1168_v46 = vld [vmem:[%s503_s20] sm:$0xff] }
 0x13c   : > { %812 = vmatpush1.bf16.msra.mxu0 %v1874_v47  ;;  %v1169_v47 = vld [vmem:[%s503_s20 + $0x8] sm:$0xff]  ;;  %s2320_s20 = smov [#allocation13]  }
 0x13d   : > { %813 = vmatprep.subr.bf16.mxu0 %v1876_v48  ;;  %s2116_s19 = sshll.u32 %s2320_s20, 4  ;;  %s2117_s19 = int_to_ptr.vmem [resolvable:$false] %s2116_s19 }
 0x13e   : > { %s2118_s11 = scalar_lea.vmem %s2117_s19, 256  ;;  %p2119_p1 = scmp.lt.s32.totalorder %s2823_s21, %s2117_s19 }
 0x13f   : > { %p2120_p2 = scmp.lt.s32.totalorder %s2118_s11, %s2112_s28 }
 0x140   : > { %814 = vmatpush1.bf16.msra.mxu0 %v1879_v49 }
 0x141   : > { %815 = vmatprep.subr.bf16.mxu0 %v1881_v50  ;;  %p2121_p7 = por %p2120_p2, %p2119_p1 }
 0x143   : > { %p2122_p8 = pnand %p2121_p7, %p2115_p5 }
 0x144   : > { %816 = vmatpush1.bf16.msra.mxu0 %v1884_v51 }
 0x145   : > { %817 = vmatprep.subr.bf16.mxu0 %v1886_v52 }
 0x148   : > { %818 = vmatpush1.bf16.msra.mxu0 %v1889_v53 }
 0x19b   : > { %v573_v54 = vpop.xlane.xlu0 %572 }
 0x19c   : > { %v575_v55 = vmul.f32 0.00390625, %v573_v54 }
 0x19e   : > { %v576_v57 = vadd.f32 1e-05, %v575_v55 }
 0x1a0   : > { %1906 = vrsqrt.f32 %v576_v57 }
 0x1aa   : > { %v1907_v2 = vpop.eup %1906 }
 0x1ab   : > { %v579_v3 = vmul.f32 %v1907_v2, %v2780_v1  ;;  %v578_v4 = vmul.f32 %v1907_v2, %v2778_v0  ;;  %v1896_v1 = vld [vmem:[#allocation8 + $0x58] sm:$0xff]  }
 0x1ac   : > { %v1897_v0 = vld [vmem:[#allocation8 + $0x18] sm:$0xff]  }
 0x1ad   : > { %v592_v5 = vmul.f32 %v588_v62, %v579_v3  ;;  %v591_v6 = vmul.f32 %v584_v63, %v578_v4 }
 0x1af   : > { %v594_v7 = vpack.c.bf16 %v592_v5, %v592_v5  ;;  %v593_v8 = vpack.c.bf16 %v591_v6, %v591_v6 }
 0x1b1   : > { %819 = vmatprep.mubr.bf16.mxu0 %v594_v7  ;;  %988 = vmatprep.mubr.bf16.mxu1 %v594_v7 }
 0x1b2   : > { %820 = vmatmul.mubr.bf16.vlgmr.msra.gmra.mrb[0].mxu0 %v593_v8  ;;  %989 = vmatmul.mubr.bf16.vlgmr.msra.gmra.mrb[0].mxu1 %v593_v8 }
 0x1b3   : > { %1642 = vmatpush3.bf16.msra.mxu1 %v1891_v9  ;;  %1156 = vmatprep.mubr.bf16.mxu1 %v594_v7 }
 0x1b4   : > { %1643 = vmatprep.subr.bf16.mxu1 %v1892_v10 }
 0x1b7   : > { %1644 = vmatpush3.bf16.msra.mxu1 %v1893_v11 }
 0x1b8   : > { %1645 = vmatprep.subr.bf16.mxu1 %v1894_v12 }
 0x1bb   : > { %1646 = vmatpush3.bf16.msra.mxu1 %v1895_v13 }
 0x1bc   : > { %1647 = vmatprep.subr.bf16.mxu1 %v1896_v1 }
 0x1bf   : > { %1648 = vmatpush3.bf16.msra.mxu1 %v1897_v0 }
 0x1c0   : > { %1649 = vmatprep.subr.bf16.mxu1 %v1898_v14 }
 0x1c3   : > { %1650 = vmatpush3.bf16.msra.mxu1 %v1899_v15 }
 0x1c4   : > { %1651 = vmatprep.subr.bf16.mxu1 %v1900_v16 }
 0x1c7   : > { %1652 = vmatpush3.bf16.msra.mxu1 %v1901_v17 }
 0x1c8   : > { %1653 = vmatprep.subr.bf16.mxu1 %v1902_v18 }
 0x1cb   : > { %1654 = vmatpush3.bf16.msra.mxu1 %v1903_v19 }
 0x1cc   : > { %1655 = vmatprep.subr.bf16.mxu1 %v1904_v20 }
 0x1cf   : > { %1656 = vmatpush3.bf16.msra.mxu1 %v1905_v21 }
 0x1d2   : > { %1157 = vmatmul.mubr.bf16.vlgmr.msra.gmra.mrb[4].mxu1 %v593_v8 }
 0x285   : > { %v821_v22 = vpop.f32.mrb[0].mxu0  ;;  %v1635_v23 = vpop.f32.mrb[0].mxu1 }
 0x286   : > { %v1636_v24 = vpop.f32.mrb[1].mxu1  ;;  %1170 = vrot.lane.b32.xlu0 %v821_v22, %s2319_s1  ;;  %v823_v25 = vpop.f32.mrb[1].mxu0  ;;  %v1179_v48 = vmul.f32 %v1164_v38, %v821_v22 }
 0x287   : > { %v1637_v26 = vadd.f32 %v1636_v24, %v1635_v23  ;;  %v1638_v27 = vpop.f32.mrb[2].mxu1  ;;  %1172 = vrot.lane.b32.xlu1 %v823_v25, %s2319_s1  ;;  %v825_v28 = vpop.f32.mrb[2].mxu0  ;;  %v1180_v49 = vmul.f32 %v1165_v39, %v823_v25 }
 0x288   : > { %v826_v29 = vpop.f32.mrb[3].mxu0  ;;  %v1639_v30 = vpop.f32.mrb[3].mxu1 }
 0x289   : > { %v1200_v57 = vmul.f32 %v1637_v26, %v1164_v38 }
 0x28b   : > { %1198 = vrot.lane.b32.xlu1 %v1637_v26, %s2319_s1  ;;  %s2821_s1 = scalar_lea.hbm %s3059_s12, %s1608_s23 }
 0x2a5   : > { %v1657_v31 = vpop.f32.mrb[4].mxu1 }
 0x2a6   : > { %v1658_v32 = vpop.f32.mrb[5].mxu1 }
 0x2a7   : > { %v1659_v33 = vadd.f32 %v1658_v32, %v1657_v31  ;;  %v1660_v34 = vpop.f32.mrb[6].mxu1 }
 0x2a8   : > { %v1661_v35 = vpop.f32.mrb[7].mxu1 }
 0x2a9   : > { %v1207_v36 = vpack.c.bf16 %v1659_v33, %v1659_v33 }
 0x2ab   : > { %1208 = vst [vmem:[%s2795_s16] sm:$0xf] %v1207_v36 }
 0x2f8   : > { %v1171_v40 = vpop.permute.xlu0 %1170 }
 0x2f9   : > { %v1173_v43 = vpop.permute.xlu1 %1172 }
 0x2fa   : > { %v1177_v44 = vsel %vm1176_vm0, %v1171_v40, %v1173_v43  ;;  %v1178_v45 = vsel %vm1176_vm0, %v1173_v43, %v1171_v40 }
 0x2fb   : > { %v1181_v50 = vmul.f32 %v1177_v44, %v1166_v41  ;;  %v1182_v51 = vmul.f32 %v1178_v45, %v1167_v42  ;;  %v1185_v53 = vmul.f32 %v1178_v45, %v1168_v46  ;;  %v1186_v54 = vmul.f32 %v1177_v44, %v1169_v47 }
 0x2fd   : > { %v1183_v52 = vadd.f32 %v1181_v50, %v1179_v48  ;;  %v1199_v55 = vpop.permute.xlu1 %1198  ;;  %v1184_v56 = vadd.f32 %v1182_v51, %v1180_v49 }
 0x2fe   : > { %v1201_v58 = vmul.f32 %v1199_v55, %v1166_v41  ;;  %v1203_v62 = vmul.f32 %v1199_v55, %v1168_v46 }
 0x2ff   : > { %v1187_v59 = vadd.f32 %v1185_v53, %v1183_v52  ;;  %v1188_v60 = vadd.f32 %v1186_v54, %v1184_v56 }
 0x300   : > { %v1202_v61 = vadd.f32 %v1201_v58, %v1200_v57 }
 0x301   : > { %v1618_v63 = vpack.c.bf16 %v1188_v60, %v1187_v59 }
 0x302   : > { %v1204_v2 = vadd.f32 %v1203_v62, %v1202_v61 }
 0x303   : > { %1197 = vst [vmem:[%s550_s29] sm:$0xff] %v1618_v63 }
 0x304   : > { %v1205_v3 = vpack.c.bf16 %v1204_v2, %v1204_v2 }
 0x305   : > { %2125 = shalt.err (!%p2122_p8)
}
 0x306   : > { %s2126_s26 = scalar_lea.hbm %s2821_s1, 128  ;;  %s2130_s22 = scalar_lea.hbm %s3059_s12, 512 }
 0x307   : > { %p2127_p3 = scmp.ne.s32.totalorder %s2821_s1, %s2126_s26  ;;  %p2131_p10 = scmp.lt.u32.totalorder %s2821_s1, %s3059_s12 }
 0x308   : > { %p2132_p4 = scmp.lt.u32.totalorder %s2130_s22, %s2126_s26  ;;  %p2134_p6 = scmp.lt.u32.totalorder %s2126_s26, %s2821_s1 }
 0x309   : > { %p2128_p12 = pnand %p2127_p3, %p3061_p11 }
 0x30a   : > { %p2133_p0 = por %p2132_p4, %p2131_p10 }
 0x30b   : > { %p2129_p13 = pneg %p2128_p12 }
 0x30c   : > { %p2135_p9 = por %p2134_p6, %p2133_p0 }
 0x30e   : > { %p2136_p5 = pnand %p2135_p9, %p2129_p13 }
 0x310   : > { %2139 = shalt.err (!%p2136_p5)
}
 0x311   : > { %1683 = dma.vmem_to_hbm [thread:$0]  (%p3061_p11), %s2823_s21, 128, %s2821_s1, %s1210_s10   ;;  %1206 = vst [vmem:[%s2815_s27] sm:$0xf] %v1205_v3 }
 0x312   : > { %s3062_s20 = sld [smem:[#allocation45_spill]]  ;;  %s2871_s26 = scalar_lea.sflag [#allocation15], %s460_s3 }
 0x313   : > { %s2140_s23 = scalar_lea.vmem %s2833_s0, 64  ;;  %s2321_s29 = smov [#allocation14]  }
 0x314   : > { %p2141_p1 = scmp.ne.s32.totalorder %s2833_s0, %s2140_s23  ;;  %s2144_s21 = sshll.u32 %s2321_s29, 4  ;;  %s2145_s21 = int_to_ptr.vmem [resolvable:$false] %s2144_s21 }
 0x315   : > { %s2146_s4 = scalar_lea.vmem %s2145_s21, 128  ;;  %p2147_p8 = scmp.lt.s32.totalorder %s2833_s0, %s2145_s21 }
 0x316   : > { %p2142_p2 = pnand %p2141_p1, %p3061_p11  ;;  %p2148_p3 = scmp.lt.s32.totalorder %s2146_s4, %s2140_s23 }
 0x318   : > { %s3063_s11 = smov %s3062_s20  ;;  %s2862_s19 = scalar_lea.hbm %s3062_s20, %s1610_s18 }
 0x319   : > { %p2143_p7 = pneg %p2142_p2  ;;  %p2149_p12 = por %p2148_p3, %p2147_p8 }
 0x31b   : > { %p2150_p13 = pnand %p2149_p12, %p2143_p7 }
 0x31d   : > { %2153 = shalt.err (!%p2150_p13)
}
 0x31e   : > { %s2154_s24 = scalar_lea.hbm %s2831_s13, 64  ;;  %s2158_s18 = scalar_lea.hbm %s3060_s6, 256 }
 0x31f   : > { %p2155_p10 = scmp.ne.s32.totalorder %s2831_s13, %s2154_s24  ;;  %p2159_p6 = scmp.lt.u32.totalorder %s2831_s13, %s3060_s6 }
 0x320   : > { %p2160_p9 = scmp.lt.u32.totalorder %s2158_s18, %s2154_s24  ;;  %p2162_p1 = scmp.lt.u32.totalorder %s2154_s24, %s2831_s13 }
 0x321   : > { %p2156_p4 = pnand %p2155_p10, %p3061_p11 }
 0x322   : > { %p2161_p5 = por %p2160_p9, %p2159_p6 }
 0x323   : > { %p2157_p0 = pneg %p2156_p4 }
 0x324   : > { %p2163_p2 = por %p2162_p1, %p2161_p5 }
 0x326   : > { %p2164_p7 = pnand %p2163_p2, %p2157_p0 }
 0x328   : > { %2167 = shalt.err (!%p2164_p7)
}
 0x329   : > { %1684 = dma.vmem_to_hbm [thread:$0]  (%p3061_p11), %s2833_s0, 64, %s2831_s13, %s2871_s26  }
 0x32a   : > { %s2168_s10 = scalar_lea.vmem %s2866_s15, 64  ;;  %s2322_s22 = smov [#allocation16]  }
 0x32b   : > { %p2169_p8 = scmp.ne.s32.totalorder %s2866_s15, %s2168_s10  ;;  %s2172_s9 = sshll.u32 %s2322_s22, 4  ;;  %s2173_s9 = int_to_ptr.vmem [resolvable:$false] %s2172_s9 }
 0x32c   : > { %s2174_s30 = scalar_lea.vmem %s2173_s9, 128  ;;  %p2175_p13 = scmp.lt.s32.totalorder %s2866_s15, %s2173_s9 }
 0x32d   : > { %p2170_p3 = pnand %p2169_p8, %p3061_p11  ;;  %p2176_p10 = scmp.lt.s32.totalorder %s2174_s30, %s2168_s10 }
 0x32f   : > { %p2171_p12 = pneg %p2170_p3  ;;  %p2177_p4 = por %p2176_p10, %p2175_p13 }
 0x331   : > { %p2178_p0 = pnand %p2177_p4, %p2171_p12 }
 0x333   : > { %2181 = shalt.err (!%p2178_p0)
}
 0x334   : > { %s2182_s0 = scalar_lea.hbm %s2862_s19, 64  ;;  %s2186_s28 = scalar_lea.hbm %s3063_s11, 256 }
 0x335   : > { %p2183_p6 = scmp.ne.s32.totalorder %s2862_s19, %s2182_s0  ;;  %p2187_p1 = scmp.lt.u32.totalorder %s2862_s19, %s3063_s11 }
 0x336   : > { %p2188_p2 = scmp.lt.u32.totalorder %s2186_s28, %s2182_s0  ;;  %p2190_p8 = scmp.lt.u32.totalorder %s2182_s0, %s2862_s19 }
 0x337   : > { %p2184_p9 = pnand %p2183_p6, %p3061_p11 }
 0x338   : > { %p2189_p7 = por %p2188_p2, %p2187_p1 }
 0x339   : > { %p2185_p5 = pneg %p2184_p9 }
 0x33a   : > { %p2191_p3 = por %p2190_p8, %p2189_p7 }
 0x33c   : > { %p2192_p12 = pnand %p2191_p3, %p2185_p5 }
 0x33e   : > { %2195 = shalt.err (!%p2192_p12)
}
 0x33f   : > { %1685 = dma.vmem_to_hbm [thread:$0]  (%p3061_p11), %s2866_s15, 64, %s2862_s19, %s2871_s26  }
 0x340 PF: > { %s3064_s29 = sld [smem:[#allocation30_spill]]  ;;  %s3065_s21 = sld [smem:[#allocation24_spill]] }
 0x341   : > { %s3066_s4 = sld [smem:[#allocation36_spill]] }
 0x346   : > { %p1729_p13 = scmp.ge.s32.totalorder %s3064_s29, 2  ;;  %s1278_s24 = sand.u32 1, %s3065_s21  }
 0x347   : > { %p3067_p10 = scmp.ne.s32.totalorder %s3066_s4, 0  ;;  %s1279_s3 = scalar_lea.sflag [#allocation4], %s1278_s24 }
 0x349   : > { %p1713_p4 = pnand %p1729_p13, %p3067_p10 }
 0x34b   : > { %2257 = dma.done.wait (!%p1713_p4), %s1279_s3, 128  }
 0x34c   : > { %2259 = vsyncadd (!%p1713_p4), %s1279_s3, 4294967168  ;;  %s3068_s16 = sadd.s32 4294967294, %s3064_s29  }
 0x34d   : > { %s1287_s18 = sand.u32 1, %s3068_s16  }
 0x34e   : > { %s1288_s27 = scalar_lea.sflag [#allocation15], %s1287_s18 }
 0x34f   : > { %2261 = dma.done.wait (!%p1713_p4), %s1288_s27, 128  }
 0x350   : > { %2263 = vsyncadd (!%p1713_p4), %s1288_s27, 4294967168  ;;  %s32_s23 = sadd.s32 1, %s3064_s29   ;;  %s3069_s8 = sld [smem:[#allocation23_spill]] }
 0x351   : > { %p29_p11 = scmp.ge.s32.totalorder %s32_s23, 6   ;;  %s3070_s15 = sld [smem:[#allocation33_spill]] }
 0x352   : > { %s3071_s19 = sld [smem:[#allocation25_spill]]  ;;  %s3072_s18 = sld [smem:[#allocation34_spill]] }
 0x353   : > { %s3073_s26 = sld [smem:[#allocation28_spill]]  ;;  %s3074_s20 = sld [smem:[#allocation29_spill]] }
 0x354   : > { %s3075_s21 = sld [smem:[#allocation31_spill]]  ;;  %s3076_s22 = sld [smem:[#allocation32_spill]] }
 0x355   : > { %s3077_s13 = smov %s2270_s14  ;;  %s3079_s16 = smov %s2282_s17 }
 0x356   : > { %s3078_s14 = smov %s3069_s8  ;;  %31 = sbr.rel (!%p29_p11) target bundleno = 23 (0x17), region = 174 }
 0x358   : > { %s3080_s17 = smov %s3071_s19 }
 0x359   : > { %s3081_s19 = smov %s3073_s26 }
 0x35d   :  { %1302 = vsyncpa [#allocation3], 1 }
 0x35e   :  { %1304 = vsyncpa [#allocation3 + $0x1], 1 }
 0x35f   :  { %1305 = vsyncpa [#allocation6], 1 }
 0x360   :  { %1306 = vsyncpa [#allocation9], 1 }
 0x361   :  { %1307 = vsyncpa [#allocation4], 1 }
 0x362   :  { %1309 = vsyncpa [#allocation4 + $0x1], 1 }
 0x363   :  { %1310 = vsyncpa [#allocation15], 1 }
 0x364   :  { %1312 = vsyncpa [#allocation15 + $0x1], 1 }

</bundles_post_ra>
